<compile_context>
chip_gen: v5e
topology: v5e:2x2
jax: 0.10.0
libtpu: 0.0.40
codegen_flags: <defaults>
</compile_context>

<pallas_src>
import functools

import jax
import jax.numpy as jnp
from jax.experimental import pallas as pl
from jax.experimental.pallas import tpu as pltpu


def _round_up(x, m):
    return (x + m - 1) // m * m


def _vmem_capacity_bytes():
    try:
        return int(pltpu.get_tpu_info().vmem_capacity_bytes)
    except Exception:
        return 64 * 1024 * 1024  # conservative fallback (v7x per-core VMEM)


# ------------------------------ Pallas kernel ------------------------------ #
def _tap_conv_kernel(body_ref, halo_ref, w_ref, b_ref, o_ref, win_ref, *, offs, act):
    """out[m, :] = act(sum_t window[m + offs[t], :] @ W[t] + bias), m in [0, tm).

    body_ref: (1, tm, K)   halo_ref: (1, hb, K)   w_ref: (T, K, Cp)
    b_ref: (1, Cp) f32     o_ref: (1, tm, Cp)     win_ref: (tm+hb, K) scratch
    """
    tm = body_ref.shape[1]
    hb = halo_ref.shape[1]
    cp = o_ref.shape[2]
    # Stage the contiguous (tm + hb)-row window once; every tap is then a
    # static-offset VMEM slice (fused patch extraction, no HBM im2col).
    win_ref[0:tm, :] = body_ref[0]
    win_ref[tm:tm + hb, :] = halo_ref[0]

    acc = jnp.zeros((tm, cp), jnp.float32)
    for t, d in enumerate(offs):
        acc = acc + jnp.dot(win_ref[d:d + tm, :], w_ref[t],
                            preferred_element_type=jnp.float32)
    acc = acc + b_ref[...]                       # (1, Cp) broadcasts over rows
    if act == "leaky_relu":
        acc = jnp.maximum(acc, 0.2 * acc)        # LeakyReLU(0.2): one vmul+vmax
    elif act == "sigmoid":
        acc = 1.0 / (1.0 + jnp.exp(-acc))        # exact sigmoid (exp on the EUP)
    o_ref[0] = acc.astype(o_ref.dtype)


# ------------------------------ Tiling logic ------------------------------- #
def _pick_tiles(m_valid, k, cp, max_off, n_batch, out_itemsize):
    """Choose (tm, hb): rows per grid step and the halo-block row count."""
    cap = _vmem_capacity_bytes()
    # Approx bytes per output row: double-buffered bf16 LHS + out, f32 acc, staging.
    per_row = 2 * 2 * k + 2 * out_itemsize * cp + 4 * cp + 2 * k
    budget = max(1 << 20, min(cap // 6, 12 << 20))
    tm_min = max(16, _round_up(max_off, 16))
    tm_cap = min(2048, max(16, budget // max(per_row, 1)), _round_up(m_valid, 16))
    tm_cap = _round_up(max(tm_cap, tm_min), 16)

    # Prefer a tile with little round-up waste (fewer padded/garbage rows).
    slack = max(16, m_valid // 16)
    tm = tm_cap
    t = tm_cap
    while t >= tm_min:
        if _round_up(m_valid, t) - m_valid <= slack:
            tm = t
            break
        t -= 16

    # Guarantee >=2 grid blocks on a parallel axis for v7x megacore when batch==1.
    if n_batch == 1 and _round_up(m_valid, tm) == tm:
        half = _round_up((m_valid + 1) // 2, 16)
        if tm_min <= half < tm:
            tm = half

    # Halo block: smallest multiple-of-16 divisor of tm covering max tap offset.
    hb = tm
    d = 16
    while d < tm:
        if tm % d == 0 and d >= max_off:
            hb = d
            break
        d += 16
    return tm, hb


# --------------------------- Fused conv wrapper ----------------------------- #
def _fused_tap_conv(xf, w_taps, bias, offs, m_valid, act, out_dtype):
    """out[n, m, :] = act(sum_t xf[n, m + offs[t], :] @ w_taps[t] + bias),
    computed for m in [0, m_pad); rows beyond m_valid (and the flat-layout gap
    rows) are garbage and sliced off by the caller."""
    n, r0, k = xf.shape
    t_taps, k2, cp = w_taps.shape
    assert k2 == k
    max_off = int(max(offs))
    out_itemsize = jnp.dtype(out_dtype).itemsize

    tm, hb = _pick_tiles(m_valid, k, cp, max_off, n, out_itemsize)
    m_pad = _round_up(m_valid, tm)
    n_groups = m_pad // tm
    r_need = m_pad + hb
    if r_need > r0:
        xf = jnp.pad(xf, ((0, 0), (0, r_need - r0), (0, 0)))

    weight_bytes = t_taps * k * cp * 2
    vmem_need = (2 * (tm + hb) * k * 2            # double-buffered body + halo (bf16)
                 + 2 * tm * cp * out_itemsize     # double-buffered out
                 + 2 * weight_bytes + cp * 4      # resident weights + bias
                 + (tm + hb) * k * 2              # staging scratch
                 + 2 * tm * cp * 4)               # f32 accumulator headroom
    cap = _vmem_capacity_bytes()
    vmem_limit = int(min(max(2 * vmem_need, 32 << 20),
                         max(cap - (8 << 20), 32 << 20)))

    bytes_accessed = (n * m_pad * k * 2                  # body reads
                      + n * n_groups * hb * k * 2        # halo re-reads
                      + weight_bytes + cp * 4            # resident weights + bias
                      + n * m_pad * cp * out_itemsize)   # output writeback
    cost = pl.CostEstimate(
        flops=2 * n * m_pad * k * cp * t_taps,
        transcendentals=(2 * n * m_pad * cp) if act == "sigmoid" else 0,
        bytes_accessed=bytes_accessed)

    out = pl.pallas_call(
        functools.partial(_tap_conv_kernel,
                          offs=tuple(int(o) for o in offs), act=act),
        out_shape=jax.ShapeDtypeStruct((n, m_pad, cp), out_dtype),
        grid=(n, n_groups),
        in_specs=[
            pl.BlockSpec((1, tm, k), lambda b, i: (b, i, 0)),                    # body rows
            pl.BlockSpec((1, hb, k), lambda b, i: (b, (i + 1) * (tm // hb), 0)),  # halo rows
            pl.BlockSpec((t_taps, k, cp), lambda b, i: (0, 0, 0)),               # resident W
            pl.BlockSpec((1, cp), lambda b, i: (0, 0)),                          # bias
        ],
        out_specs=pl.BlockSpec((1, tm, cp), lambda b, i: (b, i, 0)),
        scratch_shapes=[pltpu.VMEM((tm + hb, k), jnp.bfloat16)],
        compiler_params=pltpu.CompilerParams(
            dimension_semantics=("parallel", "parallel"),
            vmem_limit_bytes=vmem_limit),
        cost_estimate=cost,
    )(xf, xf, w_taps, bias)
    return out[:, :m_valid, :]


# ------------------------- Weight / layer plumbing -------------------------- #
def _weights_stride2_taps(w_oihw, cin_p, cout_p):
    """(Cout,Cin,4,4) -> (4 taps, 4*cin_p, cout_p) for the space-to-depth conv.
    tap = r*2 + s (row/col block shift); row = (p*2+q)*cin_p + cin."""
    cout, cin = w_oihw.shape[0], w_oihw.shape[1]
    w = jnp.pad(w_oihw, ((0, cout_p - cout), (0, cin_p - cin), (0, 0), (0, 0)))
    w = w.reshape(cout_p, cin_p, 2, 2, 2, 2)       # (co, ci, r, p, s, q)
    w = jnp.transpose(w, (2, 4, 3, 5, 1, 0))       # (r, s, p, q, ci, co)
    return w.reshape(4, 4 * cin_p, cout_p)


def _weights_stride1_taps(w_oihw, cin_p, cout_p):
    """(Cout,Cin,4,4) -> (16 taps, cin_p, cout_p); tap = p*4 + q."""
    cout, cin = w_oihw.shape[0], w_oihw.shape[1]
    w = jnp.pad(w_oihw, ((0, cout_p - cout), (0, cin_p - cin), (0, 0), (0, 0)))
    w = jnp.transpose(w, (2, 3, 1, 0))             # (p, q, ci, co)
    return w.reshape(16, cin_p, cout_p)


def _conv4x4_s2_lrelu(x_nhwc, w_taps, bias, cout_p):
    """4x4 stride-2 reflect-pad conv + LeakyReLU(0.2), channels pre-padded."""
    n, h, w, c = x_nhwc.shape
    if h % 2 or w % 2:
        # TODO(synk): support odd spatial dims (PyTorch floor-divides the size);
        # the space-to-depth reshape below requires even H and W.
        raise NotImplementedError("even spatial dims required")
    xp = jnp.pad(x_nhwc, ((0, 0), (1, 1), (1, 1), (0, 0)), mode="reflect")
    a, b = (h + 2) // 2, (w + 2) // 2
    ho, wo = a - 1, b - 1
    # space-to-depth (cheap rearrange, ~1x activation): the 4x4/s2 conv becomes
    # a 2x2/s1 conv over yf with tap offsets {0, 1, b, b+1} in flat row space.
    yf = xp.reshape(n, a, 2, b, 2, c).transpose(0, 1, 3, 2, 4, 5)
    yf = yf.reshape(n, a * b, 4 * c)
    offs = (0, 1, b, b + 1)
    out = _fused_tap_conv(yf, w_taps, bias, offs, ho * b, "leaky_relu", jnp.bfloat16)
    return out.reshape(n, ho, b, cout_p)[:, :, :wo, :]


def _conv4x4_s1(x_nhwc, w_taps, bias, cout_p, act, out_dtype):
    """4x4 stride-1 reflect-pad conv + activation (final layer)."""
    n, h, w, c = x_nhwc.shape
    xp = jnp.pad(x_nhwc, ((0, 0), (1, 1), (1, 1), (0, 0)), mode="reflect")
    hp, wp = h + 2, w + 2
    ho, wo = h - 1, w - 1
    xf = xp.reshape(n, hp * wp, c)
    offs = tuple(p * wp + q for p in range(4) for q in range(4))
    out = _fused_tap_conv(xf, w_taps, bias, offs, ho * wp, act, out_dtype)
    return out.reshape(n, ho, wp, cout_p)[:, :, :wo, :]


# --------------------------------- Model ------------------------------------ #
def init_discriminator_params(key, input_channels, num_filters):
    """Deterministic synthetic parameters (shapes match the nn.Module)."""
    shapes = [
        (num_filters, input_channels, 4, 4),
        (num_filters * 2, num_filters, 4, 4),
        (num_filters * 4, num_filters * 2, 4, 4),
        (1, num_filters * 4, 4, 4),
    ]
    params = []
    for shp in shapes:
        key, kw, kb = jax.random.split(key, 3)
        fan_in = shp[1] * shp[2] * shp[3]
        w = jax.random.normal(kw, shp, jnp.float32) * (1.0 / jnp.sqrt(fan_in))
        b = jax.random.normal(kb, (shp[0],), jnp.float32) * 0.01
        params.append((w, b))
    return params


def discriminator_forward(x_nchw, params):
    """Forward pass matching torch semantics; input/output are NCHW float32."""
    (w1, b1), (w2, b2), (w3, b3), (w4, b4) = params
    cin = x_nchw.shape[1]
    cin_p = _round_up(cin, 8)
    # Cout padded only to a multiple of 8 (review item): lane layout stays legal
    # (Cp equals the full last dim) while halving traffic/FLOPs vs. padding to 128.
    c1p = _round_up(w1.shape[0], 8)
    c2p = _round_up(w2.shape[0], 8)
    c3p = _round_up(w3.shape[0], 8)
    c4p = _round_up(w4.shape[0], 8)

    # NCHW -> NHWC, bf16, input channels padded once; the padded layout is
    # carried through every layer (no per-layer slice / re-pad of channels).
    x = jnp.transpose(x_nchw, (0, 2, 3, 1)).astype(jnp.bfloat16)
    x = jnp.pad(x, ((0, 0), (0, 0), (0, 0), (0, cin_p - cin)))

    def bias_pad(bb, cp):
        return jnp.pad(bb, (0, cp - bb.shape[0])).reshape(1, cp).astype(jnp.float32)

    x = _conv4x4_s2_lrelu(
        x, _weights_stride2_taps(w1, cin_p, c1p).astype(jnp.bfloat16),
        bias_pad(b1, c1p), c1p)
    x = _conv4x4_s2_lrelu(
        x, _weights_stride2_taps(w2, c1p, c2p).astype(jnp.bfloat16),
        bias_pad(b2, c2p), c2p)
    x = _conv4x4_s2_lrelu(
        x, _weights_stride2_taps(w3, c2p, c3p).astype(jnp.bfloat16),
        bias_pad(b3, c3p), c3p)
    x = _conv4x4_s1(
        x, _weights_stride1_taps(w4, c3p, c4p).astype(jnp.bfloat16),
        bias_pad(b4, c4p), c4p, "sigmoid", jnp.float32)

    x = x[..., :w4.shape[0]]                  # drop padded output channels
    return jnp.transpose(x, (0, 3, 1, 2))     # NHWC -> NCHW


# ------------------------------ f32 reference -------------------------------- #
def _reference_forward(x_nchw, params):
    x = jnp.transpose(x_nchw, (0, 2, 3, 1)).astype(jnp.float32)
    strides = (2, 2, 2, 1)
    for idx, (w, b) in enumerate(params):
        xp = jnp.pad(x, ((0, 0), (1, 1), (1, 1), (0, 0)), mode="reflect")
        y = jax.lax.conv_general_dilated(
            xp, jnp.transpose(w, (2, 3, 1, 0)),
            window_strides=(strides[idx], strides[idx]), padding="VALID",
            dimension_numbers=("NHWC", "HWIO", "NHWC")) + b
        x = jnp.where(y >= 0, y, 0.2 * y) if idx < 3 else jax.nn.sigmoid(y)
    return jnp.transpose(x, (0, 3, 1, 2))


if __name__ == "__main__":
    key = jax.random.PRNGKey(0)
    k_in, k_params = jax.random.split(key)

    input_channels = 4
    num_filters = 8          # small, shape-consistent stand-in for the default 64
    x = jax.random.normal(k_in, (2, input_channels, 16, 16), jnp.float32)
    params = init_discriminator_params(k_params, input_channels, num_filters)

    fwd = jax.jit(discriminator_forward)
    out = jax.block_until_ready(fwd(x, params))

    # 16 -> 8 -> 4 -> 2 spatially, then stride-1 conv -> 1x1, 1 channel, sigmoid.
    assert out.shape == (2, 1, 1, 1), out.shape
    assert bool(jnp.all((out >= 0.0) & (out <= 1.0)))

    # Numerical sanity check vs. an f32 XLA reference (bf16 operands -> loose tol).
    ref = jax.block_until_ready(_reference_forward(x, params))
    max_err = float(jnp.max(jnp.abs(out - ref)))
    assert bool(jnp.allclose(out, ref, atol=5e-2, rtol=5e-2)), max_err
    print("KERNEL_OK")
</pallas_src>

<mosaic_0001>
module attributes {stable_mosaic.version = 11 : i64} {
  func.func @_tap_conv_kernel(%arg0: i32, %arg1: i32, %arg2: memref<1x80x32xbf16, #tpu.memory_space<vmem>>, %arg3: memref<1x16x32xbf16, #tpu.memory_space<vmem>>, %arg4: memref<4x32x8xbf16, #tpu.memory_space<vmem>>, %arg5: memref<1x8xf32, #tpu.memory_space<vmem>>, %arg6: memref<1x80x8xbf16, #tpu.memory_space<vmem>>, %arg7: memref<96x32xbf16, #tpu.memory_space<vmem>>) attributes {dimension_semantics = [#tpu.dimension_semantics<parallel>, #tpu.dimension_semantics<parallel>], iteration_bounds = array<i64: 2, 1>, scalar_prefetch = 0 : i64, scratch_operands = 1 : i64, tpu.core_type = #tpu.core_type<tc>, window_params = [{transform_indices = @transform_0, window_bounds = array<i64: 1, 80, 32>}, {transform_indices = @transform_1, window_bounds = array<i64: 1, 16, 32>}, {pipeline_mode = #tpu.pipeline_mode<synchronous>, transform_indices = @transform_2, window_bounds = array<i64: 4, 32, 8>}, {pipeline_mode = #tpu.pipeline_mode<synchronous>, transform_indices = @transform_3, window_bounds = array<i64: 1, 8>}, {transform_indices = @transform_4, window_bounds = array<i64: 1, 80, 8>}]} {
    %c0 = arith.constant 0 : index
    %c0_0 = arith.constant 0 : index
    %c0_1 = arith.constant 0 : index
    %0 = vector.load %arg2[%c0, %c0_0, %c0_1] : memref<1x80x32xbf16, #tpu.memory_space<vmem>>, vector<1x80x32xbf16>
    %1 = vector.shape_cast %0 : vector<1x80x32xbf16> to vector<80x32xbf16>
    %c0_2 = arith.constant 0 : index
    %c0_3 = arith.constant 0 : index
    %2 = vector.load %arg7[%c0_2, %c0_3] : memref<96x32xbf16, #tpu.memory_space<vmem>>, vector<80x32xbf16>
    tpu.vector_store %arg7[%c0_2, %c0_3], %1 {strides = array<i32>} : memref<96x32xbf16, #tpu.memory_space<vmem>>, vector<80x32xbf16>,
    %c0_4 = arith.constant 0 : index
    %c0_5 = arith.constant 0 : index
    %c0_6 = arith.constant 0 : index
    %3 = vector.load %arg3[%c0_4, %c0_5, %c0_6] : memref<1x16x32xbf16, #tpu.memory_space<vmem>>, vector<1x16x32xbf16>
    %4 = vector.shape_cast %3 : vector<1x16x32xbf16> to vector<16x32xbf16>
    %c80 = arith.constant 80 : index
    %c0_7 = arith.constant 0 : index
    %5 = vector.load %arg7[%c80, %c0_7] : memref<96x32xbf16, #tpu.memory_space<vmem>>, vector<16x32xbf16>
    tpu.vector_store %arg7[%c80, %c0_7], %4 {strides = array<i32>} : memref<96x32xbf16, #tpu.memory_space<vmem>>, vector<16x32xbf16>,
    %cst = arith.constant 0.000000e+00 : f32
    %6 = vector.broadcast %cst : f32 to vector<80x8xf32>
    %c0_8 = arith.constant 0 : index
    %c0_9 = arith.constant 0 : index
    %7 = vector.load %arg7[%c0_8, %c0_9] : memref<96x32xbf16, #tpu.memory_space<vmem>>, vector<80x32xbf16>
    %c0_10 = arith.constant 0 : index
    %c0_11 = arith.constant 0 : index
    %c0_12 = arith.constant 0 : index
    %8 = vector.load %arg4[%c0_10, %c0_11, %c0_12] : memref<4x32x8xbf16, #tpu.memory_space<vmem>>, vector<1x32x8xbf16>
    %9 = vector.shape_cast %8 : vector<1x32x8xbf16> to vector<32x8xbf16>
    %cst_13 = arith.constant dense<0.000000e+00> : vector<80x8xf32>
    %10 = tpu.matmul %7, %9, %cst_13 {dimension_numbers = #tpu.dot_dimension_numbers<[1], [0], [0], [1], [0, 0, 1, 1], [], []>} : vector<80x32xbf16>, vector<32x8xbf16>, vector<80x8xf32> -> vector<80x8xf32>
    %11 = arith.addf %6, %10 : vector<80x8xf32>
    %c1 = arith.constant 1 : index
    %c0_14 = arith.constant 0 : index
    %12 = vector.load %arg7[%c1, %c0_14] : memref<96x32xbf16, #tpu.memory_space<vmem>>, vector<80x32xbf16>
    %c1_15 = arith.constant 1 : index
    %c0_16 = arith.constant 0 : index
    %c0_17 = arith.constant 0 : index
    %13 = vector.load %arg4[%c1_15, %c0_16, %c0_17] : memref<4x32x8xbf16, #tpu.memory_space<vmem>>, vector<1x32x8xbf16>
    %14 = vector.shape_cast %13 : vector<1x32x8xbf16> to vector<32x8xbf16>
    %cst_18 = arith.constant dense<0.000000e+00> : vector<80x8xf32>
    %15 = tpu.matmul %12, %14, %cst_18 {dimension_numbers = #tpu.dot_dimension_numbers<[1], [0], [0], [1], [0, 0, 1, 1], [], []>} : vector<80x32xbf16>, vector<32x8xbf16>, vector<80x8xf32> -> vector<80x8xf32>
    %16 = arith.addf %11, %15 : vector<80x8xf32>
    %c9 = arith.constant 9 : index
    %c0_19 = arith.constant 0 : index
    %17 = vector.load %arg7[%c9, %c0_19] : memref<96x32xbf16, #tpu.memory_space<vmem>>, vector<80x32xbf16>
    %c2 = arith.constant 2 : index
    %c0_20 = arith.constant 0 : index
    %c0_21 = arith.constant 0 : index
    %18 = vector.load %arg4[%c2, %c0_20, %c0_21] : memref<4x32x8xbf16, #tpu.memory_space<vmem>>, vector<1x32x8xbf16>
    %19 = vector.shape_cast %18 : vector<1x32x8xbf16> to vector<32x8xbf16>
    %cst_22 = arith.constant dense<0.000000e+00> : vector<80x8xf32>
    %20 = tpu.matmul %17, %19, %cst_22 {dimension_numbers = #tpu.dot_dimension_numbers<[1], [0], [0], [1], [0, 0, 1, 1], [], []>} : vector<80x32xbf16>, vector<32x8xbf16>, vector<80x8xf32> -> vector<80x8xf32>
    %21 = arith.addf %16, %20 : vector<80x8xf32>
    %c10 = arith.constant 10 : index
    %c0_23 = arith.constant 0 : index
    %22 = vector.load %arg7[%c10, %c0_23] : memref<96x32xbf16, #tpu.memory_space<vmem>>, vector<80x32xbf16>
    %c3 = arith.constant 3 : index
    %c0_24 = arith.constant 0 : index
    %c0_25 = arith.constant 0 : index
    %23 = vector.load %arg4[%c3, %c0_24, %c0_25] : memref<4x32x8xbf16, #tpu.memory_space<vmem>>, vector<1x32x8xbf16>
    %24 = vector.shape_cast %23 : vector<1x32x8xbf16> to vector<32x8xbf16>
    %cst_26 = arith.constant dense<0.000000e+00> : vector<80x8xf32>
    %25 = tpu.matmul %22, %24, %cst_26 {dimension_numbers = #tpu.dot_dimension_numbers<[1], [0], [0], [1], [0, 0, 1, 1], [], []>} : vector<80x32xbf16>, vector<32x8xbf16>, vector<80x8xf32> -> vector<80x8xf32>
    %26 = arith.addf %21, %25 : vector<80x8xf32>
    %c0_27 = arith.constant 0 : index
    %c0_28 = arith.constant 0 : index
    %27 = vector.load %arg5[%c0_27, %c0_28] : memref<1x8xf32, #tpu.memory_space<vmem>>, vector<1x8xf32>
    %28 = vector.broadcast %27 : vector<1x8xf32> to vector<80x8xf32>
    %29 = arith.addf %26, %28 : vector<80x8xf32>
    %cst_29 = arith.constant 2.000000e-01 : f32
    %30 = vector.broadcast %cst_29 : f32 to vector<80x8xf32>
    %31 = arith.mulf %30, %29 : vector<80x8xf32>
    %32 = arith.maximumf %29, %31 : vector<80x8xf32>
    %33 = arith.truncf %32 : vector<80x8xf32> to vector<80x8xbf16>
    %c0_30 = arith.constant 0 : index
    %c0_31 = arith.constant 0 : index
    %c0_32 = arith.constant 0 : index
    %34 = vector.load %arg6[%c0_30, %c0_31, %c0_32] : memref<1x80x8xbf16, #tpu.memory_space<vmem>>, vector<1x80x8xbf16>
    %35 = vector.shape_cast %34 : vector<1x80x8xbf16> to vector<80x8xbf16>
    %36 = vector.shape_cast %33 : vector<80x8xbf16> to vector<1x80x8xbf16>
    tpu.vector_store %arg6[%c0_30, %c0_31, %c0_32], %36 {strides = array<i32>} : memref<1x80x8xbf16, #tpu.memory_space<vmem>>, vector<1x80x8xbf16>,
    return
  }
  func.func @transform_0(%arg0: i32, %arg1: i32) -> (i32, i32, i32) {
    %c0_i32 = arith.constant 0 : i32
    %c0_i32_0 = arith.constant 0 : i32
    return %arg0, %arg1, %c0_i32 : i32, i32, i32
  }
  func.func @transform_1(%arg0: i32, %arg1: i32) -> (i32, i32, i32) {
    %c1_i32 = arith.constant 1 : i32
    %0 = arith.addi %arg1, %c1_i32 : i32
    %c5_i32 = arith.constant 5 : i32
    %1 = arith.muli %0, %c5_i32 : i32
    %c0_i32 = arith.constant 0 : i32
    %c0_i32_0 = arith.constant 0 : i32
    return %arg0, %1, %c0_i32 : i32, i32, i32
  }
  func.func @transform_2(%arg0: i32, %arg1: i32) -> (i32, i32, i32) {
    %c0_i32 = arith.constant 0 : i32
    %c0_i32_0 = arith.constant 0 : i32
    %c0_i32_1 = arith.constant 0 : i32
    %c0_i32_2 = arith.constant 0 : i32
    return %c0_i32, %c0_i32_0, %c0_i32_1 : i32, i32, i32
  }
  func.func @transform_3(%arg0: i32, %arg1: i32) -> (i32, i32) {
    %c0_i32 = arith.constant 0 : i32
    %c0_i32_0 = arith.constant 0 : i32
    %c0_i32_1 = arith.constant 0 : i32
    return %c0_i32, %c0_i32_0 : i32, i32
  }
  func.func @transform_4(%arg0: i32, %arg1: i32) -> (i32, i32, i32) {
    %c0_i32 = arith.constant 0 : i32
    %c0_i32_0 = arith.constant 0 : i32
    return %arg0, %arg1, %c0_i32 : i32, i32, i32
  }
}

module attributes {stable_mosaic.version = 11 : i64} {
  func.func @_tap_conv_kernel(%arg0: i32, %arg1: i32, %arg2: memref<1x32x32xbf16, #tpu.memory_space<vmem>>, %arg3: memref<1x16x32xbf16, #tpu.memory_space<vmem>>, %arg4: memref<4x32x16xbf16, #tpu.memory_space<vmem>>, %arg5: memref<1x16xf32, #tpu.memory_space<vmem>>, %arg6: memref<1x32x16xbf16, #tpu.memory_space<vmem>>, %arg7: memref<48x32xbf16, #tpu.memory_space<vmem>>) attributes {dimension_semantics = [#tpu.dimension_semantics<parallel>, #tpu.dimension_semantics<parallel>], iteration_bounds = array<i64: 2, 1>, scalar_prefetch = 0 : i64, scratch_operands = 1 : i64, tpu.core_type = #tpu.core_type<tc>, window_params = [{transform_indices = @transform_0, window_bounds = array<i64: 1, 32, 32>}, {transform_indices = @transform_1, window_bounds = array<i64: 1, 16, 32>}, {pipeline_mode = #tpu.pipeline_mode<synchronous>, transform_indices = @transform_2, window_bounds = array<i64: 4, 32, 16>}, {pipeline_mode = #tpu.pipeline_mode<synchronous>, transform_indices = @transform_3, window_bounds = array<i64: 1, 16>}, {transform_indices = @transform_4, window_bounds = array<i64: 1, 32, 16>}]} {
    %c0 = arith.constant 0 : index
    %c0_0 = arith.constant 0 : index
    %c0_1 = arith.constant 0 : index
    %0 = vector.load %arg2[%c0, %c0_0, %c0_1] : memref<1x32x32xbf16, #tpu.memory_space<vmem>>, vector<1x32x32xbf16>
    %1 = vector.shape_cast %0 : vector<1x32x32xbf16> to vector<32x32xbf16>
    %c0_2 = arith.constant 0 : index
    %c0_3 = arith.constant 0 : index
    %2 = vector.load %arg7[%c0_2, %c0_3] : memref<48x32xbf16, #tpu.memory_space<vmem>>, vector<32x32xbf16>
    tpu.vector_store %arg7[%c0_2, %c0_3], %1 {strides = array<i32>} : memref<48x32xbf16, #tpu.memory_space<vmem>>, vector<32x32xbf16>,
    %c0_4 = arith.constant 0 : index
    %c0_5 = arith.constant 0 : index
    %c0_6 = arith.constant 0 : index
    %3 = vector.load %arg3[%c0_4, %c0_5, %c0_6] : memref<1x16x32xbf16, #tpu.memory_space<vmem>>, vector<1x16x32xbf16>
    %4 = vector.shape_cast %3 : vector<1x16x32xbf16> to vector<16x32xbf16>
    %c32 = arith.constant 32 : index
    %c0_7 = arith.constant 0 : index
    %5 = vector.load %arg7[%c32, %c0_7] : memref<48x32xbf16, #tpu.memory_space<vmem>>, vector<16x32xbf16>
    tpu.vector_store %arg7[%c32, %c0_7], %4 {strides = array<i32>} : memref<48x32xbf16, #tpu.memory_space<vmem>>, vector<16x32xbf16>,
    %cst = arith.constant 0.000000e+00 : f32
    %6 = vector.broadcast %cst : f32 to vector<32x16xf32>
    %c0_8 = arith.constant 0 : index
    %c0_9 = arith.constant 0 : index
    %7 = vector.load %arg7[%c0_8, %c0_9] : memref<48x32xbf16, #tpu.memory_space<vmem>>, vector<32x32xbf16>
    %c0_10 = arith.constant 0 : index
    %c0_11 = arith.constant 0 : index
    %c0_12 = arith.constant 0 : index
    %8 = vector.load %arg4[%c0_10, %c0_11, %c0_12] : memref<4x32x16xbf16, #tpu.memory_space<vmem>>, vector<1x32x16xbf16>
    %9 = vector.shape_cast %8 : vector<1x32x16xbf16> to vector<32x16xbf16>
    %cst_13 = arith.constant dense<0.000000e+00> : vector<32x16xf32>
    %10 = tpu.matmul %7, %9, %cst_13 {dimension_numbers = #tpu.dot_dimension_numbers<[1], [0], [0], [1], [0, 0, 1, 1], [], []>} : vector<32x32xbf16>, vector<32x16xbf16>, vector<32x16xf32> -> vector<32x16xf32>
    %11 = arith.addf %6, %10 : vector<32x16xf32>
    %c1 = arith.constant 1 : index
    %c0_14 = arith.constant 0 : index
    %12 = vector.load %arg7[%c1, %c0_14] : memref<48x32xbf16, #tpu.memory_space<vmem>>, vector<32x32xbf16>
    %c1_15 = arith.constant 1 : index
    %c0_16 = arith.constant 0 : index
    %c0_17 = arith.constant 0 : index
    %13 = vector.load %arg4[%c1_15, %c0_16, %c0_17] : memref<4x32x16xbf16, #tpu.memory_space<vmem>>, vector<1x32x16xbf16>
    %14 = vector.shape_cast %13 : vector<1x32x16xbf16> to vector<32x16xbf16>
    %cst_18 = arith.constant dense<0.000000e+00> : vector<32x16xf32>
    %15 = tpu.matmul %12, %14, %cst_18 {dimension_numbers = #tpu.dot_dimension_numbers<[1], [0], [0], [1], [0, 0, 1, 1], [], []>} : vector<32x32xbf16>, vector<32x16xbf16>, vector<32x16xf32> -> vector<32x16xf32>
    %16 = arith.addf %11, %15 : vector<32x16xf32>
    %c5 = arith.constant 5 : index
    %c0_19 = arith.constant 0 : index
    %17 = vector.load %arg7[%c5, %c0_19] : memref<48x32xbf16, #tpu.memory_space<vmem>>, vector<32x32xbf16>
    %c2 = arith.constant 2 : index
    %c0_20 = arith.constant 0 : index
    %c0_21 = arith.constant 0 : index
    %18 = vector.load %arg4[%c2, %c0_20, %c0_21] : memref<4x32x16xbf16, #tpu.memory_space<vmem>>, vector<1x32x16xbf16>
    %19 = vector.shape_cast %18 : vector<1x32x16xbf16> to vector<32x16xbf16>
    %cst_22 = arith.constant dense<0.000000e+00> : vector<32x16xf32>
    %20 = tpu.matmul %17, %19, %cst_22 {dimension_numbers = #tpu.dot_dimension_numbers<[1], [0], [0], [1], [0, 0, 1, 1], [], []>} : vector<32x32xbf16>, vector<32x16xbf16>, vector<32x16xf32> -> vector<32x16xf32>
    %21 = arith.addf %16, %20 : vector<32x16xf32>
    %c6 = arith.constant 6 : index
    %c0_23 = arith.constant 0 : index
    %22 = vector.load %arg7[%c6, %c0_23] : memref<48x32xbf16, #tpu.memory_space<vmem>>, vector<32x32xbf16>
    %c3 = arith.constant 3 : index
    %c0_24 = arith.constant 0 : index
    %c0_25 = arith.constant 0 : index
    %23 = vector.load %arg4[%c3, %c0_24, %c0_25] : memref<4x32x16xbf16, #tpu.memory_space<vmem>>, vector<1x32x16xbf16>
    %24 = vector.shape_cast %23 : vector<1x32x16xbf16> to vector<32x16xbf16>
    %cst_26 = arith.constant dense<0.000000e+00> : vector<32x16xf32>
    %25 = tpu.matmul %22, %24, %cst_26 {dimension_numbers = #tpu.dot_dimension_numbers<[1], [0], [0], [1], [0, 0, 1, 1], [], []>} : vector<32x32xbf16>, vector<32x16xbf16>, vector<32x16xf32> -> vector<32x16xf32>
    %26 = arith.addf %21, %25 : vector<32x16xf32>
    %c0_27 = arith.constant 0 : index
    %c0_28 = arith.constant 0 : index
    %27 = vector.load %arg5[%c0_27, %c0_28] : memref<1x16xf32, #tpu.memory_space<vmem>>, vector<1x16xf32>
    %28 = vector.broadcast %27 : vector<1x16xf32> to vector<32x16xf32>
    %29 = arith.addf %26, %28 : vector<32x16xf32>
    %cst_29 = arith.constant 2.000000e-01 : f32
    %30 = vector.broadcast %cst_29 : f32 to vector<32x16xf32>
    %31 = arith.mulf %30, %29 : vector<32x16xf32>
    %32 = arith.maximumf %29, %31 : vector<32x16xf32>
    %33 = arith.truncf %32 : vector<32x16xf32> to vector<32x16xbf16>
    %c0_30 = arith.constant 0 : index
    %c0_31 = arith.constant 0 : index
    %c0_32 = arith.constant 0 : index
    %34 = vector.load %arg6[%c0_30, %c0_31, %c0_32] : memref<1x32x16xbf16, #tpu.memory_space<vmem>>, vector<1x32x16xbf16>
    %35 = vector.shape_cast %34 : vector<1x32x16xbf16> to vector<32x16xbf16>
    %36 = vector.shape_cast %33 : vector<32x16xbf16> to vector<1x32x16xbf16>
    tpu.vector_store %arg6[%c0_30, %c0_31, %c0_32], %36 {strides = array<i32>} : memref<1x32x16xbf16, #tpu.memory_space<vmem>>, vector<1x32x16xbf16>,
    return
  }
  func.func @transform_0(%arg0: i32, %arg1: i32) -> (i32, i32, i32) {
    %c0_i32 = arith.constant 0 : i32
    %c0_i32_0 = arith.constant 0 : i32
    return %arg0, %arg1, %c0_i32 : i32, i32, i32
  }
  func.func @transform_1(%arg0: i32, %arg1: i32) -> (i32, i32, i32) {
    %c1_i32 = arith.constant 1 : i32
    %0 = arith.addi %arg1, %c1_i32 : i32
    %c2_i32 = arith.constant 2 : i32
    %1 = arith.muli %0, %c2_i32 : i32
    %c0_i32 = arith.constant 0 : i32
    %c0_i32_0 = arith.constant 0 : i32
    return %arg0, %1, %c0_i32 : i32, i32, i32
  }
  func.func @transform_2(%arg0: i32, %arg1: i32) -> (i32, i32, i32) {
    %c0_i32 = arith.constant 0 : i32
    %c0_i32_0 = arith.constant 0 : i32
    %c0_i32_1 = arith.constant 0 : i32
    %c0_i32_2 = arith.constant 0 : i32
    return %c0_i32, %c0_i32_0, %c0_i32_1 : i32, i32, i32
  }
  func.func @transform_3(%arg0: i32, %arg1: i32) -> (i32, i32) {
    %c0_i32 = arith.constant 0 : i32
    %c0_i32_0 = arith.constant 0 : i32
    %c0_i32_1 = arith.constant 0 : i32
    return %c0_i32, %c0_i32_0 : i32, i32
  }
  func.func @transform_4(%arg0: i32, %arg1: i32) -> (i32, i32, i32) {
    %c0_i32 = arith.constant 0 : i32
    %c0_i32_0 = arith.constant 0 : i32
    return %arg0, %arg1, %c0_i32 : i32, i32, i32
  }
}

module attributes {stable_mosaic.version = 11 : i64} {
  func.func @_tap_conv_kernel(%arg0: i32, %arg1: i32, %arg2: memref<1x16x64xbf16, #tpu.memory_space<vmem>>, %arg3: memref<1x16x64xbf16, #tpu.memory_space<vmem>>, %arg4: memref<4x64x32xbf16, #tpu.memory_space<vmem>>, %arg5: memref<1x32xf32, #tpu.memory_space<vmem>>, %arg6: memref<1x16x32xbf16, #tpu.memory_space<vmem>>, %arg7: memref<32x64xbf16, #tpu.memory_space<vmem>>) attributes {dimension_semantics = [#tpu.dimension_semantics<parallel>, #tpu.dimension_semantics<parallel>], iteration_bounds = array<i64: 2, 1>, scalar_prefetch = 0 : i64, scratch_operands = 1 : i64, tpu.core_type = #tpu.core_type<tc>, window_params = [{transform_indices = @transform_0, window_bounds = array<i64: 1, 16, 64>}, {transform_indices = @transform_1, window_bounds = array<i64: 1, 16, 64>}, {pipeline_mode = #tpu.pipeline_mode<synchronous>, transform_indices = @transform_2, window_bounds = array<i64: 4, 64, 32>}, {pipeline_mode = #tpu.pipeline_mode<synchronous>, transform_indices = @transform_3, window_bounds = array<i64: 1, 32>}, {transform_indices = @transform_4, window_bounds = array<i64: 1, 16, 32>}]} {
    %c0 = arith.constant 0 : index
    %c0_0 = arith.constant 0 : index
    %c0_1 = arith.constant 0 : index
    %0 = vector.load %arg2[%c0, %c0_0, %c0_1] : memref<1x16x64xbf16, #tpu.memory_space<vmem>>, vector<1x16x64xbf16>
    %1 = vector.shape_cast %0 : vector<1x16x64xbf16> to vector<16x64xbf16>
    %c0_2 = arith.constant 0 : index
    %c0_3 = arith.constant 0 : index
    %2 = vector.load %arg7[%c0_2, %c0_3] : memref<32x64xbf16, #tpu.memory_space<vmem>>, vector<16x64xbf16>
    tpu.vector_store %arg7[%c0_2, %c0_3], %1 {strides = array<i32>} : memref<32x64xbf16, #tpu.memory_space<vmem>>, vector<16x64xbf16>,
    %c0_4 = arith.constant 0 : index
    %c0_5 = arith.constant 0 : index
    %c0_6 = arith.constant 0 : index
    %3 = vector.load %arg3[%c0_4, %c0_5, %c0_6] : memref<1x16x64xbf16, #tpu.memory_space<vmem>>, vector<1x16x64xbf16>
    %4 = vector.shape_cast %3 : vector<1x16x64xbf16> to vector<16x64xbf16>
    %c16 = arith.constant 16 : index
    %c0_7 = arith.constant 0 : index
    %5 = vector.load %arg7[%c16, %c0_7] : memref<32x64xbf16, #tpu.memory_space<vmem>>, vector<16x64xbf16>
    tpu.vector_store %arg7[%c16, %c0_7], %4 {strides = array<i32>} : memref<32x64xbf16, #tpu.memory_space<vmem>>, vector<16x64xbf16>,
    %cst = arith.constant 0.000000e+00 : f32
    %6 = vector.broadcast %cst : f32 to vector<16x32xf32>
    %c0_8 = arith.constant 0 : index
    %c0_9 = arith.constant 0 : index
    %7 = vector.load %arg7[%c0_8, %c0_9] : memref<32x64xbf16, #tpu.memory_space<vmem>>, vector<16x64xbf16>
    %c0_10 = arith.constant 0 : index
    %c0_11 = arith.constant 0 : index
    %c0_12 = arith.constant 0 : index
    %8 = vector.load %arg4[%c0_10, %c0_11, %c0_12] : memref<4x64x32xbf16, #tpu.memory_space<vmem>>, vector<1x64x32xbf16>
    %9 = vector.shape_cast %8 : vector<1x64x32xbf16> to vector<64x32xbf16>
    %cst_13 = arith.constant dense<0.000000e+00> : vector<16x32xf32>
    %10 = tpu.matmul %7, %9, %cst_13 {dimension_numbers = #tpu.dot_dimension_numbers<[1], [0], [0], [1], [0, 0, 1, 1], [], []>} : vector<16x64xbf16>, vector<64x32xbf16>, vector<16x32xf32> -> vector<16x32xf32>
    %11 = arith.addf %6, %10 : vector<16x32xf32>
    %c1 = arith.constant 1 : index
    %c0_14 = arith.constant 0 : index
    %12 = vector.load %arg7[%c1, %c0_14] : memref<32x64xbf16, #tpu.memory_space<vmem>>, vector<16x64xbf16>
    %c1_15 = arith.constant 1 : index
    %c0_16 = arith.constant 0 : index
    %c0_17 = arith.constant 0 : index
    %13 = vector.load %arg4[%c1_15, %c0_16, %c0_17] : memref<4x64x32xbf16, #tpu.memory_space<vmem>>, vector<1x64x32xbf16>
    %14 = vector.shape_cast %13 : vector<1x64x32xbf16> to vector<64x32xbf16>
    %cst_18 = arith.constant dense<0.000000e+00> : vector<16x32xf32>
    %15 = tpu.matmul %12, %14, %cst_18 {dimension_numbers = #tpu.dot_dimension_numbers<[1], [0], [0], [1], [0, 0, 1, 1], [], []>} : vector<16x64xbf16>, vector<64x32xbf16>, vector<16x32xf32> -> vector<16x32xf32>
    %16 = arith.addf %11, %15 : vector<16x32xf32>
    %c3 = arith.constant 3 : index
    %c0_19 = arith.constant 0 : index
    %17 = vector.load %arg7[%c3, %c0_19] : memref<32x64xbf16, #tpu.memory_space<vmem>>, vector<16x64xbf16>
    %c2 = arith.constant 2 : index
    %c0_20 = arith.constant 0 : index
    %c0_21 = arith.constant 0 : index
    %18 = vector.load %arg4[%c2, %c0_20, %c0_21] : memref<4x64x32xbf16, #tpu.memory_space<vmem>>, vector<1x64x32xbf16>
    %19 = vector.shape_cast %18 : vector<1x64x32xbf16> to vector<64x32xbf16>
    %cst_22 = arith.constant dense<0.000000e+00> : vector<16x32xf32>
    %20 = tpu.matmul %17, %19, %cst_22 {dimension_numbers = #tpu.dot_dimension_numbers<[1], [0], [0], [1], [0, 0, 1, 1], [], []>} : vector<16x64xbf16>, vector<64x32xbf16>, vector<16x32xf32> -> vector<16x32xf32>
    %21 = arith.addf %16, %20 : vector<16x32xf32>
    %c4 = arith.constant 4 : index
    %c0_23 = arith.constant 0 : index
    %22 = vector.load %arg7[%c4, %c0_23] : memref<32x64xbf16, #tpu.memory_space<vmem>>, vector<16x64xbf16>
    %c3_24 = arith.constant 3 : index
    %c0_25 = arith.constant 0 : index
    %c0_26 = arith.constant 0 : index
    %23 = vector.load %arg4[%c3_24, %c0_25, %c0_26] : memref<4x64x32xbf16, #tpu.memory_space<vmem>>, vector<1x64x32xbf16>
    %24 = vector.shape_cast %23 : vector<1x64x32xbf16> to vector<64x32xbf16>
    %cst_27 = arith.constant dense<0.000000e+00> : vector<16x32xf32>
    %25 = tpu.matmul %22, %24, %cst_27 {dimension_numbers = #tpu.dot_dimension_numbers<[1], [0], [0], [1], [0, 0, 1, 1], [], []>} : vector<16x64xbf16>, vector<64x32xbf16>, vector<16x32xf32> -> vector<16x32xf32>
    %26 = arith.addf %21, %25 : vector<16x32xf32>
    %c0_28 = arith.constant 0 : index
    %c0_29 = arith.constant 0 : index
    %27 = vector.load %arg5[%c0_28, %c0_29] : memref<1x32xf32, #tpu.memory_space<vmem>>, vector<1x32xf32>
    %28 = vector.broadcast %27 : vector<1x32xf32> to vector<16x32xf32>
    %29 = arith.addf %26, %28 : vector<16x32xf32>
    %cst_30 = arith.constant 2.000000e-01 : f32
    %30 = vector.broadcast %cst_30 : f32 to vector<16x32xf32>
    %31 = arith.mulf %30, %29 : vector<16x32xf32>
    %32 = arith.maximumf %29, %31 : vector<16x32xf32>
    %33 = arith.truncf %32 : vector<16x32xf32> to vector<16x32xbf16>
    %c0_31 = arith.constant 0 : index
    %c0_32 = arith.constant 0 : index
    %c0_33 = arith.constant 0 : index
    %34 = vector.load %arg6[%c0_31, %c0_32, %c0_33] : memref<1x16x32xbf16, #tpu.memory_space<vmem>>, vector<1x16x32xbf16>
    %35 = vector.shape_cast %34 : vector<1x16x32xbf16> to vector<16x32xbf16>
    %36 = vector.shape_cast %33 : vector<16x32xbf16> to vector<1x16x32xbf16>
    tpu.vector_store %arg6[%c0_31, %c0_32, %c0_33], %36 {strides = array<i32>} : memref<1x16x32xbf16, #tpu.memory_space<vmem>>, vector<1x16x32xbf16>,
    return
  }
  func.func @transform_0(%arg0: i32, %arg1: i32) -> (i32, i32, i32) {
    %c0_i32 = arith.constant 0 : i32
    %c0_i32_0 = arith.constant 0 : i32
    return %arg0, %arg1, %c0_i32 : i32, i32, i32
  }
  func.func @transform_1(%arg0: i32, %arg1: i32) -> (i32, i32, i32) {
    %c1_i32 = arith.constant 1 : i32
    %0 = arith.addi %arg1, %c1_i32 : i32
    %c1_i32_0 = arith.constant 1 : i32
    %1 = arith.muli %0, %c1_i32_0 : i32
    %c0_i32 = arith.constant 0 : i32
    %c0_i32_1 = arith.constant 0 : i32
    return %arg0, %1, %c0_i32 : i32, i32, i32
  }
  func.func @transform_2(%arg0: i32, %arg1: i32) -> (i32, i32, i32) {
    %c0_i32 = arith.constant 0 : i32
    %c0_i32_0 = arith.constant 0 : i32
    %c0_i32_1 = arith.constant 0 : i32
    %c0_i32_2 = arith.constant 0 : i32
    return %c0_i32, %c0_i32_0, %c0_i32_1 : i32, i32, i32
  }
  func.func @transform_3(%arg0: i32, %arg1: i32) -> (i32, i32) {
    %c0_i32 = arith.constant 0 : i32
    %c0_i32_0 = arith.constant 0 : i32
    %c0_i32_1 = arith.constant 0 : i32
    return %c0_i32, %c0_i32_0 : i32, i32
  }
  func.func @transform_4(%arg0: i32, %arg1: i32) -> (i32, i32, i32) {
    %c0_i32 = arith.constant 0 : i32
    %c0_i32_0 = arith.constant 0 : i32
    return %arg0, %arg1, %c0_i32 : i32, i32, i32
  }
}

module attributes {stable_mosaic.version = 11 : i64} {
  func.func @_tap_conv_kernel(%arg0: i32, %arg1: i32, %arg2: memref<1x16x32xbf16, #tpu.memory_space<vmem>>, %arg3: memref<1x16x32xbf16, #tpu.memory_space<vmem>>, %arg4: memref<16x32x8xbf16, #tpu.memory_space<vmem>>, %arg5: memref<1x8xf32, #tpu.memory_space<vmem>>, %arg6: memref<1x16x8xf32, #tpu.memory_space<vmem>>, %arg7: memref<32x32xbf16, #tpu.memory_space<vmem>>) attributes {dimension_semantics = [#tpu.dimension_semantics<parallel>, #tpu.dimension_semantics<parallel>], iteration_bounds = array<i64: 2, 1>, scalar_prefetch = 0 : i64, scratch_operands = 1 : i64, tpu.core_type = #tpu.core_type<tc>, window_params = [{transform_indices = @transform_0, window_bounds = array<i64: 1, 16, 32>}, {transform_indices = @transform_1, window_bounds = array<i64: 1, 16, 32>}, {pipeline_mode = #tpu.pipeline_mode<synchronous>, transform_indices = @transform_2, window_bounds = array<i64: 16, 32, 8>}, {pipeline_mode = #tpu.pipeline_mode<synchronous>, transform_indices = @transform_3, window_bounds = array<i64: 1, 8>}, {transform_indices = @transform_4, window_bounds = array<i64: 1, 16, 8>}]} {
    %c0 = arith.constant 0 : index
    %c0_0 = arith.constant 0 : index
    %c0_1 = arith.constant 0 : index
    %0 = vector.load %arg2[%c0, %c0_0, %c0_1] : memref<1x16x32xbf16, #tpu.memory_space<vmem>>, vector<1x16x32xbf16>
    %1 = vector.shape_cast %0 : vector<1x16x32xbf16> to vector<16x32xbf16>
    %c0_2 = arith.constant 0 : index
    %c0_3 = arith.constant 0 : index
    %2 = vector.load %arg7[%c0_2, %c0_3] : memref<32x32xbf16, #tpu.memory_space<vmem>>, vector<16x32xbf16>
    tpu.vector_store %arg7[%c0_2, %c0_3], %1 {strides = array<i32>} : memref<32x32xbf16, #tpu.memory_space<vmem>>, vector<16x32xbf16>,
    %c0_4 = arith.constant 0 : index
    %c0_5 = arith.constant 0 : index
    %c0_6 = arith.constant 0 : index
    %3 = vector.load %arg3[%c0_4, %c0_5, %c0_6] : memref<1x16x32xbf16, #tpu.memory_space<vmem>>, vector<1x16x32xbf16>
    %4 = vector.shape_cast %3 : vector<1x16x32xbf16> to vector<16x32xbf16>
    %c16 = arith.constant 16 : index
    %c0_7 = arith.constant 0 : index
    %5 = vector.load %arg7[%c16, %c0_7] : memref<32x32xbf16, #tpu.memory_space<vmem>>, vector<16x32xbf16>
    tpu.vector_store %arg7[%c16, %c0_7], %4 {strides = array<i32>} : memref<32x32xbf16, #tpu.memory_space<vmem>>, vector<16x32xbf16>,
    %cst = arith.constant 0.000000e+00 : f32
    %6 = vector.broadcast %cst : f32 to vector<16x8xf32>
    %c0_8 = arith.constant 0 : index
    %c0_9 = arith.constant 0 : index
    %7 = vector.load %arg7[%c0_8, %c0_9] : memref<32x32xbf16, #tpu.memory_space<vmem>>, vector<16x32xbf16>
    %c0_10 = arith.constant 0 : index
    %c0_11 = arith.constant 0 : index
    %c0_12 = arith.constant 0 : index
    %8 = vector.load %arg4[%c0_10, %c0_11, %c0_12] : memref<16x32x8xbf16, #tpu.memory_space<vmem>>, vector<1x32x8xbf16>
    %9 = vector.shape_cast %8 : vector<1x32x8xbf16> to vector<32x8xbf16>
    %cst_13 = arith.constant dense<0.000000e+00> : vector<16x8xf32>
    %10 = tpu.matmul %7, %9, %cst_13 {dimension_numbers = #tpu.dot_dimension_numbers<[1], [0], [0], [1], [0, 0, 1, 1], [], []>} : vector<16x32xbf16>, vector<32x8xbf16>, vector<16x8xf32> -> vector<16x8xf32>
    %11 = arith.addf %6, %10 : vector<16x8xf32>
    %c1 = arith.constant 1 : index
    %c0_14 = arith.constant 0 : index
    %12 = vector.load %arg7[%c1, %c0_14] : memref<32x32xbf16, #tpu.memory_space<vmem>>, vector<16x32xbf16>
    %c1_15 = arith.constant 1 : index
    %c0_16 = arith.constant 0 : index
    %c0_17 = arith.constant 0 : index
    %13 = vector.load %arg4[%c1_15, %c0_16, %c0_17] : memref<16x32x8xbf16, #tpu.memory_space<vmem>>, vector<1x32x8xbf16>
    %14 = vector.shape_cast %13 : vector<1x32x8xbf16> to vector<32x8xbf16>
    %cst_18 = arith.constant dense<0.000000e+00> : vector<16x8xf32>
    %15 = tpu.matmul %12, %14, %cst_18 {dimension_numbers = #tpu.dot_dimension_numbers<[1], [0], [0], [1], [0, 0, 1, 1], [], []>} : vector<16x32xbf16>, vector<32x8xbf16>, vector<16x8xf32> -> vector<16x8xf32>
    %16 = arith.addf %11, %15 : vector<16x8xf32>
    %c2 = arith.constant 2 : index
    %c0_19 = arith.constant 0 : index
    %17 = vector.load %arg7[%c2, %c0_19] : memref<32x32xbf16, #tpu.memory_space<vmem>>, vector<16x32xbf16>
    %c2_20 = arith.constant 2 : index
    %c0_21 = arith.constant 0 : index
    %c0_22 = arith.constant 0 : index
    %18 = vector.load %arg4[%c2_20, %c0_21, %c0_22] : memref<16x32x8xbf16, #tpu.memory_space<vmem>>, vector<1x32x8xbf16>
    %19 = vector.shape_cast %18 : vector<1x32x8xbf16> to vector<32x8xbf16>
    %cst_23 = arith.constant dense<0.000000e+00> : vector<16x8xf32>
    %20 = tpu.matmul %17, %19, %cst_23 {dimension_numbers = #tpu.dot_dimension_numbers<[1], [0], [0], [1], [0, 0, 1, 1], [], []>} : vector<16x32xbf16>, vector<32x8xbf16>, vector<16x8xf32> -> vector<16x8xf32>
    %21 = arith.addf %16, %20 : vector<16x8xf32>
    %c3 = arith.constant 3 : index
    %c0_24 = arith.constant 0 : index
    %22 = vector.load %arg7[%c3, %c0_24] : memref<32x32xbf16, #tpu.memory_space<vmem>>, vector<16x32xbf16>
    %c3_25 = arith.constant 3 : index
    %c0_26 = arith.constant 0 : index
    %c0_27 = arith.constant 0 : index
    %23 = vector.load %arg4[%c3_25, %c0_26, %c0_27] : memref<16x32x8xbf16, #tpu.memory_space<vmem>>, vector<1x32x8xbf16>
    %24 = vector.shape_cast %23 : vector<1x32x8xbf16> to vector<32x8xbf16>
    %cst_28 = arith.constant dense<0.000000e+00> : vector<16x8xf32>
    %25 = tpu.matmul %22, %24, %cst_28 {dimension_numbers = #tpu.dot_dimension_numbers<[1], [0], [0], [1], [0, 0, 1, 1], [], []>} : vector<16x32xbf16>, vector<32x8xbf16>, vector<16x8xf32> -> vector<16x8xf32>
    %26 = arith.addf %21, %25 : vector<16x8xf32>
    %c4 = arith.constant 4 : index
    %c0_29 = arith.constant 0 : index
    %27 = vector.load %arg7[%c4, %c0_29] : memref<32x32xbf16, #tpu.memory_space<vmem>>, vector<16x32xbf16>
    %c4_30 = arith.constant 4 : index
    %c0_31 = arith.constant 0 : index
    %c0_32 = arith.constant 0 : index
    %28 = vector.load %arg4[%c4_30, %c0_31, %c0_32] : memref<16x32x8xbf16, #tpu.memory_space<vmem>>, vector<1x32x8xbf16>
    %29 = vector.shape_cast %28 : vector<1x32x8xbf16> to vector<32x8xbf16>
    %cst_33 = arith.constant dense<0.000000e+00> : vector<16x8xf32>
    %30 = tpu.matmul %27, %29, %cst_33 {dimension_numbers = #tpu.dot_dimension_numbers<[1], [0], [0], [1], [0, 0, 1, 1], [], []>} : vector<16x32xbf16>, vector<32x8xbf16>, vector<16x8xf32> -> vector<16x8xf32>
    %31 = arith.addf %26, %30 : vector<16x8xf32>
    %c5 = arith.constant 5 : index
    %c0_34 = arith.constant 0 : index
    %32 = vector.load %arg7[%c5, %c0_34] : memref<32x32xbf16, #tpu.memory_space<vmem>>, vector<16x32xbf16>
    %c5_35 = arith.constant 5 : index
    %c0_36 = arith.constant 0 : index
    %c0_37 = arith.constant 0 : index
    %33 = vector.load %arg4[%c5_35, %c0_36, %c0_37] : memref<16x32x8xbf16, #tpu.memory_space<vmem>>, vector<1x32x8xbf16>
    %34 = vector.shape_cast %33 : vector<1x32x8xbf16> to vector<32x8xbf16>
    %cst_38 = arith.constant dense<0.000000e+00> : vector<16x8xf32>
    %35 = tpu.matmul %32, %34, %cst_38 {dimension_numbers = #tpu.dot_dimension_numbers<[1], [0], [0], [1], [0, 0, 1, 1], [], []>} : vector<16x32xbf16>, vector<32x8xbf16>, vector<16x8xf32> -> vector<16x8xf32>
    %36 = arith.addf %31, %35 : vector<16x8xf32>
    %c6 = arith.constant 6 : index
    %c0_39 = arith.constant 0 : index
    %37 = vector.load %arg7[%c6, %c0_39] : memref<32x32xbf16, #tpu.memory_space<vmem>>, vector<16x32xbf16>
    %c6_40 = arith.constant 6 : index
    %c0_41 = arith.constant 0 : index
    %c0_42 = arith.constant 0 : index
    %38 = vector.load %arg4[%c6_40, %c0_41, %c0_42] : memref<16x32x8xbf16, #tpu.memory_space<vmem>>, vector<1x32x8xbf16>
    %39 = vector.shape_cast %38 : vector<1x32x8xbf16> to vector<32x8xbf16>
    %cst_43 = arith.constant dense<0.000000e+00> : vector<16x8xf32>
    %40 = tpu.matmul %37, %39, %cst_43 {dimension_numbers = #tpu.dot_dimension_numbers<[1], [0], [0], [1], [0, 0, 1, 1], [], []>} : vector<16x32xbf16>, vector<32x8xbf16>, vector<16x8xf32> -> vector<16x8xf32>
    %41 = arith.addf %36, %40 : vector<16x8xf32>
    %c7 = arith.constant 7 : index
    %c0_44 = arith.constant 0 : index
    %42 = vector.load %arg7[%c7, %c0_44] : memref<32x32xbf16, #tpu.memory_space<vmem>>, vector<16x32xbf16>
    %c7_45 = arith.constant 7 : index
    %c0_46 = arith.constant 0 : index
    %c0_47 = arith.constant 0 : index
    %43 = vector.load %arg4[%c7_45, %c0_46, %c0_47] : memref<16x32x8xbf16, #tpu.memory_space<vmem>>, vector<1x32x8xbf16>
    %44 = vector.shape_cast %43 : vector<1x32x8xbf16> to vector<32x8xbf16>
    %cst_48 = arith.constant dense<0.000000e+00> : vector<16x8xf32>
    %45 = tpu.matmul %42, %44, %cst_48 {dimension_numbers = #tpu.dot_dimension_numbers<[1], [0], [0], [1], [0, 0, 1, 1], [], []>} : vector<16x32xbf16>, vector<32x8xbf16>, vector<16x8xf32> -> vector<16x8xf32>
    %46 = arith.addf %41, %45 : vector<16x8xf32>
    %c8 = arith.constant 8 : index
    %c0_49 = arith.constant 0 : index
    %47 = vector.load %arg7[%c8, %c0_49] : memref<32x32xbf16, #tpu.memory_space<vmem>>, vector<16x32xbf16>
    %c8_50 = arith.constant 8 : index
    %c0_51 = arith.constant 0 : index
    %c0_52 = arith.constant 0 : index
    %48 = vector.load %arg4[%c8_50, %c0_51, %c0_52] : memref<16x32x8xbf16, #tpu.memory_space<vmem>>, vector<1x32x8xbf16>
    %49 = vector.shape_cast %48 : vector<1x32x8xbf16> to vector<32x8xbf16>
    %cst_53 = arith.constant dense<0.000000e+00> : vector<16x8xf32>
    %50 = tpu.matmul %47, %49, %cst_53 {dimension_numbers = #tpu.dot_dimension_numbers<[1], [0], [0], [1], [0, 0, 1, 1], [], []>} : vector<16x32xbf16>, vector<32x8xbf16>, vector<16x8xf32> -> vector<16x8xf32>
    %51 = arith.addf %46, %50 : vector<16x8xf32>
    %c9 = arith.constant 9 : index
    %c0_54 = arith.constant 0 : index
    %52 = vector.load %arg7[%c9, %c0_54] : memref<32x32xbf16, #tpu.memory_space<vmem>>, vector<16x32xbf16>
    %c9_55 = arith.constant 9 : index
    %c0_56 = arith.constant 0 : index
    %c0_57 = arith.constant 0 : index
    %53 = vector.load %arg4[%c9_55, %c0_56, %c0_57] : memref<16x32x8xbf16, #tpu.memory_space<vmem>>, vector<1x32x8xbf16>
    %54 = vector.shape_cast %53 : vector<1x32x8xbf16> to vector<32x8xbf16>
    %cst_58 = arith.constant dense<0.000000e+00> : vector<16x8xf32>
    %55 = tpu.matmul %52, %54, %cst_58 {dimension_numbers = #tpu.dot_dimension_numbers<[1], [0], [0], [1], [0, 0, 1, 1], [], []>} : vector<16x32xbf16>, vector<32x8xbf16>, vector<16x8xf32> -> vector<16x8xf32>
    %56 = arith.addf %51, %55 : vector<16x8xf32>
    %c10 = arith.constant 10 : index
    %c0_59 = arith.constant 0 : index
    %57 = vector.load %arg7[%c10, %c0_59] : memref<32x32xbf16, #tpu.memory_space<vmem>>, vector<16x32xbf16>
    %c10_60 = arith.constant 10 : index
    %c0_61 = arith.constant 0 : index
    %c0_62 = arith.constant 0 : index
    %58 = vector.load %arg4[%c10_60, %c0_61, %c0_62] : memref<16x32x8xbf16, #tpu.memory_space<vmem>>, vector<1x32x8xbf16>
    %59 = vector.shape_cast %58 : vector<1x32x8xbf16> to vector<32x8xbf16>
    %cst_63 = arith.constant dense<0.000000e+00> : vector<16x8xf32>
    %60 = tpu.matmul %57, %59, %cst_63 {dimension_numbers = #tpu.dot_dimension_numbers<[1], [0], [0], [1], [0, 0, 1, 1], [], []>} : vector<16x32xbf16>, vector<32x8xbf16>, vector<16x8xf32> -> vector<16x8xf32>
    %61 = arith.addf %56, %60 : vector<16x8xf32>
    %c11 = arith.constant 11 : index
    %c0_64 = arith.constant 0 : index
    %62 = vector.load %arg7[%c11, %c0_64] : memref<32x32xbf16, #tpu.memory_space<vmem>>, vector<16x32xbf16>
    %c11_65 = arith.constant 11 : index
    %c0_66 = arith.constant 0 : index
    %c0_67 = arith.constant 0 : index
    %63 = vector.load %arg4[%c11_65, %c0_66, %c0_67] : memref<16x32x8xbf16, #tpu.memory_space<vmem>>, vector<1x32x8xbf16>
    %64 = vector.shape_cast %63 : vector<1x32x8xbf16> to vector<32x8xbf16>
    %cst_68 = arith.constant dense<0.000000e+00> : vector<16x8xf32>
    %65 = tpu.matmul %62, %64, %cst_68 {dimension_numbers = #tpu.dot_dimension_numbers<[1], [0], [0], [1], [0, 0, 1, 1], [], []>} : vector<16x32xbf16>, vector<32x8xbf16>, vector<16x8xf32> -> vector<16x8xf32>
    %66 = arith.addf %61, %65 : vector<16x8xf32>
    %c12 = arith.constant 12 : index
    %c0_69 = arith.constant 0 : index
    %67 = vector.load %arg7[%c12, %c0_69] : memref<32x32xbf16, #tpu.memory_space<vmem>>, vector<16x32xbf16>
    %c12_70 = arith.constant 12 : index
    %c0_71 = arith.constant 0 : index
    %c0_72 = arith.constant 0 : index
    %68 = vector.load %arg4[%c12_70, %c0_71, %c0_72] : memref<16x32x8xbf16, #tpu.memory_space<vmem>>, vector<1x32x8xbf16>
    %69 = vector.shape_cast %68 : vector<1x32x8xbf16> to vector<32x8xbf16>
    %cst_73 = arith.constant dense<0.000000e+00> : vector<16x8xf32>
    %70 = tpu.matmul %67, %69, %cst_73 {dimension_numbers = #tpu.dot_dimension_numbers<[1], [0], [0], [1], [0, 0, 1, 1], [], []>} : vector<16x32xbf16>, vector<32x8xbf16>, vector<16x8xf32> -> vector<16x8xf32>
    %71 = arith.addf %66, %70 : vector<16x8xf32>
    %c13 = arith.constant 13 : index
    %c0_74 = arith.constant 0 : index
    %72 = vector.load %arg7[%c13, %c0_74] : memref<32x32xbf16, #tpu.memory_space<vmem>>, vector<16x32xbf16>
    %c13_75 = arith.constant 13 : index
    %c0_76 = arith.constant 0 : index
    %c0_77 = arith.constant 0 : index
    %73 = vector.load %arg4[%c13_75, %c0_76, %c0_77] : memref<16x32x8xbf16, #tpu.memory_space<vmem>>, vector<1x32x8xbf16>
    %74 = vector.shape_cast %73 : vector<1x32x8xbf16> to vector<32x8xbf16>
    %cst_78 = arith.constant dense<0.000000e+00> : vector<16x8xf32>
    %75 = tpu.matmul %72, %74, %cst_78 {dimension_numbers = #tpu.dot_dimension_numbers<[1], [0], [0], [1], [0, 0, 1, 1], [], []>} : vector<16x32xbf16>, vector<32x8xbf16>, vector<16x8xf32> -> vector<16x8xf32>
    %76 = arith.addf %71, %75 : vector<16x8xf32>
    %c14 = arith.constant 14 : index
    %c0_79 = arith.constant 0 : index
    %77 = vector.load %arg7[%c14, %c0_79] : memref<32x32xbf16, #tpu.memory_space<vmem>>, vector<16x32xbf16>
    %c14_80 = arith.constant 14 : index
    %c0_81 = arith.constant 0 : index
    %c0_82 = arith.constant 0 : index
    %78 = vector.load %arg4[%c14_80, %c0_81, %c0_82] : memref<16x32x8xbf16, #tpu.memory_space<vmem>>, vector<1x32x8xbf16>
    %79 = vector.shape_cast %78 : vector<1x32x8xbf16> to vector<32x8xbf16>
    %cst_83 = arith.constant dense<0.000000e+00> : vector<16x8xf32>
    %80 = tpu.matmul %77, %79, %cst_83 {dimension_numbers = #tpu.dot_dimension_numbers<[1], [0], [0], [1], [0, 0, 1, 1], [], []>} : vector<16x32xbf16>, vector<32x8xbf16>, vector<16x8xf32> -> vector<16x8xf32>
    %81 = arith.addf %76, %80 : vector<16x8xf32>
    %c15 = arith.constant 15 : index
    %c0_84 = arith.constant 0 : index
    %82 = vector.load %arg7[%c15, %c0_84] : memref<32x32xbf16, #tpu.memory_space<vmem>>, vector<16x32xbf16>
    %c15_85 = arith.constant 15 : index
    %c0_86 = arith.constant 0 : index
    %c0_87 = arith.constant 0 : index
    %83 = vector.load %arg4[%c15_85, %c0_86, %c0_87] : memref<16x32x8xbf16, #tpu.memory_space<vmem>>, vector<1x32x8xbf16>
    %84 = vector.shape_cast %83 : vector<1x32x8xbf16> to vector<32x8xbf16>
    %cst_88 = arith.constant dense<0.000000e+00> : vector<16x8xf32>
    %85 = tpu.matmul %82, %84, %cst_88 {dimension_numbers = #tpu.dot_dimension_numbers<[1], [0], [0], [1], [0, 0, 1, 1], [], []>} : vector<16x32xbf16>, vector<32x8xbf16>, vector<16x8xf32> -> vector<16x8xf32>
    %86 = arith.addf %81, %85 : vector<16x8xf32>
    %c0_89 = arith.constant 0 : index
    %c0_90 = arith.constant 0 : index
    %87 = vector.load %arg5[%c0_89, %c0_90] : memref<1x8xf32, #tpu.memory_space<vmem>>, vector<1x8xf32>
    %88 = vector.broadcast %87 : vector<1x8xf32> to vector<16x8xf32>
    %89 = arith.addf %86, %88 : vector<16x8xf32>
    %cst_91 = arith.constant 0.000000e+00 : f32
    %90 = vector.broadcast %cst_91 : f32 to vector<16x8xf32>
    %91 = arith.subf %90, %89 : vector<16x8xf32>
    %92 = math.exp %91 : vector<16x8xf32>
    %cst_92 = arith.constant 1.000000e+00 : f32
    %93 = vector.broadcast %cst_92 : f32 to vector<16x8xf32>
    %94 = arith.addf %93, %92 : vector<16x8xf32>
    %cst_93 = arith.constant 1.000000e+00 : f32
    %95 = vector.broadcast %cst_93 : f32 to vector<16x8xf32>
    %96 = arith.divf %95, %94 : vector<16x8xf32>
    %c0_94 = arith.constant 0 : index
    %c0_95 = arith.constant 0 : index
    %c0_96 = arith.constant 0 : index
    %97 = vector.load %arg6[%c0_94, %c0_95, %c0_96] : memref<1x16x8xf32, #tpu.memory_space<vmem>>, vector<1x16x8xf32>
    %98 = vector.shape_cast %97 : vector<1x16x8xf32> to vector<16x8xf32>
    %99 = vector.shape_cast %96 : vector<16x8xf32> to vector<1x16x8xf32>
    tpu.vector_store %arg6[%c0_94, %c0_95, %c0_96], %99 {strides = array<i32>} : memref<1x16x8xf32, #tpu.memory_space<vmem>>, vector<1x16x8xf32>,
    return
  }
  func.func @transform_0(%arg0: i32, %arg1: i32) -> (i32, i32, i32) {
    %c0_i32 = arith.constant 0 : i32
    %c0_i32_0 = arith.constant 0 : i32
    return %arg0, %arg1, %c0_i32 : i32, i32, i32
  }
  func.func @transform_1(%arg0: i32, %arg1: i32) -> (i32, i32, i32) {
    %c1_i32 = arith.constant 1 : i32
    %0 = arith.addi %arg1, %c1_i32 : i32
    %c1_i32_0 = arith.constant 1 : i32
    %1 = arith.muli %0, %c1_i32_0 : i32
    %c0_i32 = arith.constant 0 : i32
    %c0_i32_1 = arith.constant 0 : i32
    return %arg0, %1, %c0_i32 : i32, i32, i32
  }
  func.func @transform_2(%arg0: i32, %arg1: i32) -> (i32, i32, i32) {
    %c0_i32 = arith.constant 0 : i32
    %c0_i32_0 = arith.constant 0 : i32
    %c0_i32_1 = arith.constant 0 : i32
    %c0_i32_2 = arith.constant 0 : i32
    return %c0_i32, %c0_i32_0, %c0_i32_1 : i32, i32, i32
  }
  func.func @transform_3(%arg0: i32, %arg1: i32) -> (i32, i32) {
    %c0_i32 = arith.constant 0 : i32
    %c0_i32_0 = arith.constant 0 : i32
    %c0_i32_1 = arith.constant 0 : i32
    return %c0_i32, %c0_i32_0 : i32, i32
  }
  func.func @transform_4(%arg0: i32, %arg1: i32) -> (i32, i32, i32) {
    %c0_i32 = arith.constant 0 : i32
    %c0_i32_0 = arith.constant 0 : i32
    return %arg0, %arg1, %c0_i32 : i32, i32, i32
  }
}

</mosaic_0001>

<bundles_post_ra>
// kernel: discriminator_forward.4
= control target key start
LH: loop header
LB: loop body
LE: loop exit
PB: predicated region body
PF: predicated region fallthrough
CT: control target
= control target key end

     0   :  { %s1165_s15 = smov 0   ;;  %s1167_s16 = smov 0   ;;  %s1329_s0 = inlined_call_operand.vmem [shape: bf16[2,96,32], index: 0, kind: input, shape index: {}, may-alias: {0,1}]   ;;  %s1330_s1 = inlined_call_operand.vmem [shape: bf16[2,96,32], index: 1, kind: input, shape index: {}, may-alias: {0,1}]   ;;  %s1331_s2 = inlined_call_operand.vmem [shape: bf16[4,32,8], index: 2, kind: input, shape index: {}]   ;;  %s1332_s3 = inlined_call_operand.vmem [shape: f32[1,8], index: 3, kind: input, shape index: {}]   ;;  %s1333_s4 = inlined_call_operand.vmem [shape: bf16[2,80,8], index: 4, kind: output, shape index: {}]  }
   0x1   :  { %s1169_s17 = smov 0  }
   0x2 LB: > { %s26_s18 = sadd.s32 1, %s1134_s16  ;;  %p959_p0 = scmp.ge.s32.totalorder %s1138_s17, 1  ;;  %s1138_s17 = sphi %s1169_s17, %s14_s17   ;;  %s1134_s16 = sphi %s1167_s16, %s1335_s16   ;;  %s1130_s15 = sphi %s1165_s15, %s1334_s15  }
   0x3   : > { %p28_p1 = scmp.ge.s32.totalorder %s26_s18, 2  ;;  %p216_p2 = scmp.lt.s32.totalorder %s1138_s17, 3 }
   0x5   : > { %s1337_s18 = smov (%p28_p1, %s26_s18), 0  ;;  %p217_p3 = pnand %p959_p0, %p216_p2 }
   0x6   : > { %p270_p4 = scmp.lt.s32.totalorder (!%p217_p3), %s1130_s15, 1 }
   0x7   : > { %220 = sbr.rel (%p217_p3) target bundleno = 252 (0xfc), region = 36 }
   0xc   : > { %v1073_v0 = vld [vmem:[%s1331_s2 + $0x8] sm:$0xff]  ;;  %v1083_v1 = vld [vmem:[%s1331_s2 + $0x38] sm:$0xff]  ;;  %v1072_v4 = vld [vmem:[%s1331_s2] sm:$0xff]  ;;  %s1339_s15 = smov (!%p270_p4, %s1130_s15), 1  ;;  %vm318_vm0 = vcmask 257024   ;;  %vm438_vm1 = vcmask 261120  }
   0xd   : > { %v1075_v2 = vld [vmem:[%s1331_s2 + $0x18] sm:$0xff]  ;;  %v1081_v3 = vld [vmem:[%s1331_s2 + $0x28] sm:$0xff]  ;;  %516 = vmatpush.bf16.msra.mxu1 %v1073_v0  ;;  %757 = vmatpush.bf16.msra.mxu3 %v1083_v1  ;;  %v1082_v5 = vld [vmem:[%s1331_s2 + $0x30] sm:$0xff]  ;;  %s1084_s9 = smul.u32 48, %s1339_s15  ;;  %vm712_vm2 = vcmask 1046528   ;;  %vm839_vm4 = vcmask 60416  }
   0xe   : > { %460 = vmatpush.bf16.msra.mxu0 %v1075_v2  ;;  %665 = vmatpush.bf16.msra.mxu2 %v1081_v3  ;;  %v1074_v6 = vld [vmem:[%s1331_s2 + $0x10] sm:$0xff]  ;;  %v1080_v7 = vld [vmem:[%s1331_s2 + $0x20] sm:$0xff]  ;;  %vm381_vm3 = vsmask.f32 7424  ;;  %s1086_s23 = smul.u32 40, %s1339_s15 }
   0xf   : > { %s1215_s12 = scalar_lea.vmem %s1329_s0, %s1084_s9  ;;  %s1066_s13 = sadd.s32 40, %s1084_s9 }
  0x10   : > { %v308_v8 = vld [vmem:[%s1215_s12] sm:$0xf]  ;;  %v309_v9 = vld [vmem:[%s1215_s12 + $0x4] sm:$0xf]  ;;  %v310_v10 = vld [vmem:[%s1215_s12 + $0x8] sm:$0xf]  ;;  %s293_s20 = scalar_lea.vmem %s1330_s1, %s1066_s13  ;;  %s1289_s26 = scalar_lea.vmem %s1333_s4, %s1086_s23 }
  0x11   : > { %517 = vmatpush.bf16.msra.mxu1 %v1072_v4  ;;  %758 = vmatpush.bf16.msra.mxu3 %v1082_v5  ;;  %319 = vst.msk [vmem:[#allocation2] sm:$0xf] %vm318_vm0, %v308_v8  ;;  %v311_v11 = vld [vmem:[%s1215_s12 + $0xc] sm:$0xf]  ;;  %v312_v12 = vld [vmem:[%s1215_s12 + $0x10] sm:$0xf] }
  0x12   : > { %461 = vmatpush.bf16.msra.mxu0 %v1074_v6  ;;  %666 = vmatpush.bf16.msra.mxu2 %v1080_v7  ;;  %320 = vst.msk [vmem:[#allocation2 + $0x4] sm:$0xf] %vm318_vm0, %v309_v9  ;;  %v313_v13 = vld [vmem:[%s1215_s12 + $0x14] sm:$0xf]  ;;  %v314_v14 = vld [vmem:[%s1215_s12 + $0x18] sm:$0xf] }
  0x13   : > { %321 = vst.msk [vmem:[#allocation2 + $0x8] sm:$0xf] %vm318_vm0, %v310_v10  ;;  %v315_v15 = vld [vmem:[%s1215_s12 + $0x1c] sm:$0xf]  ;;  %v316_v16 = vld [vmem:[%s1215_s12 + $0x20] sm:$0xf] }
  0x14   : > { %322 = vst.msk [vmem:[#allocation2 + $0xc] sm:$0xf] %vm318_vm0, %v311_v11  ;;  %v317_v41 = vld [vmem:[%s1215_s12 + $0x24] sm:$0xf]  ;;  %v329_v43 = vld [vmem:[%s293_s20] sm:$0xf] }
  0x15   : > { %323 = vst.msk [vmem:[#allocation2 + $0x10] sm:$0xf] %vm318_vm0, %v312_v12  ;;  %v330_v57 = vld [vmem:[%s293_s20 + $0x4] sm:$0xf] }
  0x16   : > { %324 = vst.msk [vmem:[#allocation2 + $0x14] sm:$0xf] %vm318_vm0, %v313_v13 }
  0x17   : > { %325 = vst.msk [vmem:[#allocation2 + $0x18] sm:$0xf] %vm318_vm0, %v314_v14 }
  0x18   : > { %326 = vst.msk [vmem:[#allocation2 + $0x1c] sm:$0xf] %vm318_vm0, %v315_v15 }
  0x19   : > { %v1067_v17 = vld [vmem:[#allocation2] sm:$0xff]  ;;  %327 = vst.msk [vmem:[#allocation2 + $0x20] sm:$0xf] %vm318_vm0, %v316_v16 }
  0x1a   : > { %v1126_v18 = vld [vmem:[#allocation2 + $0x4] sm:$0xe]  ;;  %v1125_v20 = vld [vmem:[#allocation2 + $0x4] sm:$0xf0]  ;;  %v385_v21 = vshll.u32 %v1067_v17, 16  ;;  %1008 = vmatmul.msk.bf16.vlgmr.msra.gmra.mxu1 %vm438_vm1, %v1067_v17  ;;  %v383_v23 = vshrl.u32 %v1067_v17, 16 }
  0x1b   : > { %v545_v19 = vld [vmem:[#allocation2 + $0x4] sm:$0xff]   ;;  %v1127_v25 = vor.u32 %v1126_v18, %v1125_v20  ;;  %328 = vst.msk [vmem:[#allocation2 + $0x24] sm:$0xf] %vm318_vm0, %v317_v41 }
  0x1c   : > { %v1068_v22 = vld [vmem:[#allocation2 + $0x8] sm:$0xff]  ;;  %v387_v26 = vrot.slane %v385_v21, 1  ;;  %v589_v33 = vshrl.u32 %v545_v19, 16  ;;  %v591_v34 = vshll.u32 %v545_v19, 16  ;;  %331 = vst.msk [vmem:[#allocation2 + $0x28] sm:$0xf] %vm318_vm0, %v329_v43 }
  0x1d   : > { %v1076_v24 = vld [vmem:[#allocation2 + $0xc] sm:$0xff]  ;;  %v390_v27 = vshll.u32 %v1068_v22, 16  ;;  %v713_v30 = vrot.slane %v1127_v25, 1  ;;  %v394_v45 = vshrl.u32 %v1068_v22, 16  ;;  %332 = vst.msk [vmem:[#allocation2 + $0x2c] sm:$0xf] %vm318_vm0, %v330_v57 }
  0x1e   : > { %v714_v28 = vrot.slane %v1076_v24, 1  ;;  %v596_v29 = vshll.u32 %v1076_v24, 16  ;;  %v388_v31 = vor.u32 %v387_v26, %v383_v23  ;;  %v593_v37 = vrot.slane %v591_v34, 1  ;;  %v1069_v39 = vld [vmem:[#allocation2 + $0x10] sm:$0xff] }
  0x1f   : > { %v392_v32 = vrot.slane %v390_v27, 1  ;;  %v1077_v44 = vld [vmem:[#allocation2 + $0x14] sm:$0xff]  ;;  %v398_v46 = vshll.u32 %v1069_v39, 16  ;;  %v600_v50 = vshrl.u32 %v1076_v24, 16  ;;  %v402_v60 = vshrl.u32 %v1069_v39, 16 }
  0x20   : > { %v715_v35 = vsel %vm712_vm2, %v713_v30, %v714_v28  ;;  %v598_v38 = vrot.slane %v596_v29, 1  ;;  %v594_v40 = vor.u32 %v593_v37, %v589_v33  ;;  %v716_v47 = vrot.slane %v1077_v44, 1  ;;  %v1070_v56 = vld [vmem:[#allocation2 + $0x18] sm:$0xff] }
  0x21   : > { %v393_v36 = vsel %vm381_vm3, %v388_v31, %v392_v32  ;;  %1058 = vmatmul.msk.bf16.vlgmr.msra.gmra.mxu3 %vm438_vm1, %v715_v35  ;;  %v396_v48 = vor.u32 %v394_v45, %v392_v32  ;;  %v400_v49 = vrot.slane %v398_v46, 1  ;;  %v604_v51 = vshll.u32 %v1077_v44, 16  ;;  %v1078_v59 = vld [vmem:[#allocation2 + $0x1c] sm:$0xff] }
  0x22   : > { %995 = vmatmul.msk.bf16.vlgmr.msra.gmra.mxu0 %vm438_vm1, %v393_v36  ;;  %v599_v42 = vsel %vm381_vm3, %v594_v40, %v598_v38  ;;  %v717_v52 = vsel %vm712_vm2, %v714_v28, %v716_v47  ;;  %v602_v54 = vor.u32 %v600_v50, %v598_v38  ;;  %v406_v61 = vshll.u32 %v1070_v56, 16  ;;  %v1071_v7 = vld [vmem:[#allocation2 + $0x20] sm:$0xff] }
  0x23   : > { %1041 = vmatmul.msk.bf16.vlgmr.msra.gmra.mxu2 %vm438_vm1, %v599_v42  ;;  %v401_v53 = vsel %vm381_vm3, %v396_v48, %v400_v49  ;;  %v606_v55 = vrot.slane %v604_v51, 1  ;;  %v718_v62 = vrot.slane %v1078_v59, 1  ;;  %v404_v63 = vor.u32 %v402_v60, %v400_v49  ;;  %v1079_v9 = vld [vmem:[#allocation2 + $0x24] sm:$0xff]  ;;  %v1282_v49 = vld [vmem:[%s1332_s3] ss:$0 sm:$0xff] }
  0x24   : > { %v408_v0 = vrot.slane %v406_v61, 1  ;;  %v608_v1 = vshrl.u32 %v1077_v44, 16  ;;  %v612_v2 = vshll.u32 %v1078_v59, 16  ;;  %v410_v10 = vshrl.u32 %v1070_v56, 16  ;;  %v347_v17 = vld [vmem:[#allocation2 + $0x28] sm:$0x1] }
  0x25   : > { %v607_v58 = vsel %vm381_vm3, %v602_v54, %v606_v55  ;;  %v719_v3 = vsel %vm712_vm2, %v716_v47, %v718_v62  ;;  %v414_v11 = vshll.u32 %v1071_v7, 16  ;;  %v720_v12 = vrot.slane %v1079_v9, 1  ;;  %v554_v23 = vld [vmem:[#allocation2 + $0x2c] sm:$0x1] }
  0x26   : > { %v409_v4 = vsel %vm381_vm3, %v404_v63, %v408_v0  ;;  %v610_v5 = vor.u32 %v608_v1, %v606_v55  ;;  %v614_v6 = vrot.slane %v612_v2, 1  ;;  %v412_v13 = vor.u32 %v410_v10, %v408_v0 }
  0x27   : > { %v416_v14 = vrot.slane %v414_v11, 1  ;;  %v616_v15 = vshrl.u32 %v1078_v59, 16  ;;  %v620_v16 = vshll.u32 %v1079_v9, 16  ;;  %v721_v18 = vsel %vm712_vm2, %v718_v62, %v720_v12 }
  0x28   : > { %v615_v8 = vsel %vm381_vm3, %v610_v5, %v614_v6  ;;  %v374_v20 = vunpack.c.l.b16 %v347_v17  ;;  %v581_v24 = vunpack.c.l.b16 %v554_v23  ;;  %v418_v28 = vshrl.u32 %v1071_v7, 16 }
  0x29   : > { %v417_v19 = vsel %vm381_vm3, %v412_v13, %v416_v14  ;;  %v618_v21 = vor.u32 %v616_v15, %v614_v6  ;;  %v624_v33 = vshrl.u32 %v1079_v9, 16 }
  0x2a   : > { %1009 = vmatmul.msk.bf16.gmra.mxu1 %vm438_vm1, %v1068_v22  ;;  %v622_v22 = vrot.slane %v620_v16, 1  ;;  %v380_v25 = vpack.c.b16 %v374_v20, %v374_v20  ;;  %v587_v27 = vpack.c.b16 %v581_v24, %v581_v24  ;;  %v420_v31 = vor.u32 %v418_v28, %v416_v14 }
  0x2c   : > { %v623_v26 = vsel %vm381_vm3, %v618_v21, %v622_v22  ;;  %v422_v29 = vshll.u32 %v380_v25, 16  ;;  %v722_v30 = vrot.slane %v587_v27, 1  ;;  %v628_v34 = vshll.u32 %v587_v27, 16 }
  0x2d   : > { %v626_v37 = vor.u32 %v624_v33, %v622_v22 }
  0x2e   : > { %v424_v32 = vrot.slane %v422_v29, 1  ;;  %v723_v35 = vsel %vm712_vm2, %v720_v12, %v722_v30  ;;  %v630_v38 = vrot.slane %v628_v34, 1 }
  0x30   : > { %v425_v36 = vsel %vm381_vm3, %v420_v31, %v424_v32 }
  0x31   : > { %1059 = vmatmul.msk.bf16.gmra.mxu3 %vm438_vm1, %v717_v52 }
  0x32   : > { %996 = vmatmul.msk.bf16.gmra.mxu0 %vm438_vm1, %v401_v53 }
  0x33   : > { %1042 = vmatmul.msk.bf16.gmra.mxu2 %vm438_vm1, %v607_v58 }
  0x3a   : > { %1010 = vmatmul.msk.bf16.gmra.mxu1 %vm438_vm1, %v1069_v39  ;;  %v631_v39 = vsel %vm381_vm3, %v626_v37, %v630_v38 }
  0x41   : > { %1060 = vmatmul.msk.bf16.gmra.mxu3 %vm438_vm1, %v719_v3 }
  0x42   : > { %997 = vmatmul.msk.bf16.gmra.mxu0 %vm438_vm1, %v409_v4 }
  0x43   : > { %1043 = vmatmul.msk.bf16.gmra.mxu2 %vm438_vm1, %v615_v8 }
  0x4a   : > { %1011 = vmatmul.msk.bf16.gmra.mxu1 %vm438_vm1, %v1070_v56 }
  0x51   : > { %1061 = vmatmul.msk.bf16.gmra.mxu3 %vm438_vm1, %v721_v18 }
  0x52   : > { %998 = vmatmul.msk.bf16.gmra.mxu0 %vm438_vm1, %v417_v19 }
  0x53   : > { %1044 = vmatmul.msk.bf16.gmra.mxu2 %vm438_vm1, %v623_v26 }
  0x5a   : > { %1012 = vmatmul.msk.bf16.gmra.mxu1 %vm438_vm1, %v1071_v7 }
  0x61   : > { %1062 = vmatmul.msk.bf16.gmra.mxu3 %vm438_vm1, %v723_v35 }
  0x62   : > { %999 = vmatmul.msk.bf16.gmra.mxu0 %vm438_vm1, %v425_v36 }
  0x63   : > { %1045 = vmatmul.msk.bf16.gmra.mxu2 %vm438_vm1, %v631_v39 }
  0x97   : > { %v519_v40 = vpop.f32.mrf.mxu1 }
  0x9f   : > { %v463_v41 = vpop.f32.mrf.mxu0  ;;  %v521_v42 = vpop.f32.mrf.mxu1 }
  0xa0   : > { %v520_v44 = vadd.f32 %v519_v40, %v463_v41 }
  0xa4   : > { %v760_v43 = vpop.f32.mrf.mxu3 }
  0xa6   : > { %v668_v47 = vpop.f32.mrf.mxu2 }
  0xa7   : > { %v465_v45 = vpop.f32.mrf.mxu0  ;;  %v524_v46 = vpop.f32.mrf.mxu1  ;;  %v693_v48 = vadd.f32 %v668_v47, %v520_v44 }
  0xa8   : > { %v522_v54 = vadd.f32 %v521_v42, %v465_v45 }
  0xa9   : > { %v785_v50 = vadd.f32 %v760_v43, %v693_v48 }
  0xab   : > { %v799_v52 = vadd.f32 %v1282_v49, %v785_v50 }
  0xac   : > { %v762_v51 = vpop.f32.mrf.mxu3 }
  0xad   : > { %v809_v55 = vmul.f32 0.2, %v799_v52 }
  0xae   : > { %v670_v57 = vpop.f32.mrf.mxu2 }
  0xaf   : > { %v468_v53 = vpop.f32.mrf.mxu0  ;;  %v526_v56 = vpop.f32.mrf.mxu1  ;;  %v819_v58 = vmax.f32 %v799_v52, %v809_v55  ;;  %v694_v59 = vadd.f32 %v670_v57, %v522_v54 }
  0xb0   : > { %v525_v63 = vadd.f32 %v524_v46, %v468_v53 }
  0xb1   : > { %v829_v60 = vpack.c.bf16 %v819_v58, %v819_v58  ;;  %v786_v61 = vadd.f32 %v762_v51, %v694_v59 }
  0xb3   : > { %840 = vst.msk [vmem:[%s1289_s26] sm:$0xf] %vm839_vm4, %v829_v60  ;;  %v800_v0 = vadd.f32 %v1282_v49, %v786_v61 }
  0xb4   : > { %v765_v62 = vpop.f32.mrf.mxu3 }
  0xb5   : > { %v810_v2 = vmul.f32 0.2, %v800_v0 }
  0xb6   : > { %v673_v3 = vpop.f32.mrf.mxu2 }
  0xb7   : > { %v470_v1 = vpop.f32.mrf.mxu0  ;;  %v820_v4 = vmax.f32 %v800_v0, %v810_v2  ;;  %v695_v5 = vadd.f32 %v673_v3, %v525_v63  ;;  %v529_v6 = vpop.f32.mrf.mxu1 }
  0xb8   : > { %v527_v12 = vadd.f32 %v526_v56, %v470_v1 }
  0xb9   : > { %v830_v7 = vpack.c.bf16 %v820_v4, %v820_v4  ;;  %v787_v8 = vadd.f32 %v765_v62, %v695_v5 }
  0xbb   : > { %841 = vst.msk [vmem:[%s1289_s26 + $0x4] sm:$0xf] %vm839_vm4, %v830_v7  ;;  %v801_v10 = vadd.f32 %v1282_v49, %v787_v8 }
  0xbc   : > { %v767_v9 = vpop.f32.mrf.mxu3 }
  0xbd   : > { %v811_v13 = vmul.f32 0.2, %v801_v10 }
  0xbe   : > { %v675_v14 = vpop.f32.mrf.mxu2 }
  0xbf   : > { %v473_v11 = vpop.f32.mrf.mxu0  ;;  %v821_v15 = vmax.f32 %v801_v10, %v811_v13  ;;  %v696_v16 = vadd.f32 %v675_v14, %v527_v12  ;;  %v531_v20 = vpop.f32.mrf.mxu1 }
  0xc0   : > { %v530_v21 = vadd.f32 %v529_v6, %v473_v11 }
  0xc1   : > { %v831_v17 = vpack.c.bf16 %v821_v15, %v821_v15  ;;  %v788_v18 = vadd.f32 %v767_v9, %v696_v16 }
  0xc3   : > { %842 = vst.msk [vmem:[%s1289_s26 + $0x8] sm:$0xf] %vm839_vm4, %v831_v17  ;;  %v802_v22 = vadd.f32 %v1282_v49, %v788_v18 }
  0xc4   : > { %v770_v19 = vpop.f32.mrf.mxu3 }
  0xc5   : > { %v812_v24 = vmul.f32 0.2, %v802_v22 }
  0xc6   : > { %v678_v25 = vpop.f32.mrf.mxu2 }
  0xc7   : > { %v475_v23 = vpop.f32.mrf.mxu0  ;;  %v822_v26 = vmax.f32 %v802_v22, %v812_v24  ;;  %v697_v27 = vadd.f32 %v678_v25, %v530_v21  ;;  %v534_v32 = vpop.f32.mrf.mxu1 }
  0xc8   : > { %v532_v34 = vadd.f32 %v531_v20, %v475_v23 }
  0xc9   : > { %v832_v28 = vpack.c.bf16 %v822_v26, %v822_v26  ;;  %v789_v29 = vadd.f32 %v770_v19, %v697_v27 }
  0xcb   : > { %843 = vst.msk [vmem:[%s1289_s26 + $0xc] sm:$0xf] %vm839_vm4, %v832_v28  ;;  %v803_v31 = vadd.f32 %v1282_v49, %v789_v29 }
  0xcc   : > { %v772_v30 = vpop.f32.mrf.mxu3 }
  0xcd   : > { %v813_v35 = vmul.f32 0.2, %v803_v31 }
  0xce   : > { %v680_v36 = vpop.f32.mrf.mxu2 }
  0xcf   : > { %v478_v33 = vpop.f32.mrf.mxu0  ;;  %v823_v37 = vmax.f32 %v803_v31, %v813_v35  ;;  %v698_v38 = vadd.f32 %v680_v36, %v532_v34  ;;  %v536_v45 = vpop.f32.mrf.mxu1 }
  0xd0   : > { %v535_v42 = vadd.f32 %v534_v32, %v478_v33 }
  0xd1   : > { %v833_v39 = vpack.c.bf16 %v823_v37, %v823_v37  ;;  %v790_v40 = vadd.f32 %v772_v30, %v698_v38 }
  0xd3   : > { %844 = vst.msk [vmem:[%s1289_s26 + $0x10] sm:$0xf] %vm839_vm4, %v833_v39  ;;  %v804_v43 = vadd.f32 %v1282_v49, %v790_v40 }
  0xd4   : > { %v775_v41 = vpop.f32.mrf.mxu3 }
  0xd5   : > { %v814_v44 = vmul.f32 0.2, %v804_v43 }
  0xd6   : > { %v683_v47 = vpop.f32.mrf.mxu2 }
  0xd7   : > { %v480_v46 = vpop.f32.mrf.mxu0  ;;  %v824_v48 = vmax.f32 %v804_v43, %v814_v44  ;;  %v699_v50 = vadd.f32 %v683_v47, %v535_v42  ;;  %v539_v60 = vpop.f32.mrf.mxu1 }
  0xd8   : > { %v537_v55 = vadd.f32 %v536_v45, %v480_v46 }
  0xd9   : > { %v834_v51 = vpack.c.bf16 %v824_v48, %v824_v48  ;;  %v791_v52 = vadd.f32 %v775_v41, %v699_v50 }
  0xdb   : > { %845 = vst.msk [vmem:[%s1289_s26 + $0x14] sm:$0xf] %vm839_vm4, %v834_v51  ;;  %v805_v53 = vadd.f32 %v1282_v49, %v791_v52 }
  0xdc   : > { %v777_v54 = vpop.f32.mrf.mxu3 }
  0xdd   : > { %v815_v56 = vmul.f32 0.2, %v805_v53 }
  0xde   : > { %v685_v57 = vpop.f32.mrf.mxu2 }
  0xdf   : > { %v825_v58 = vmax.f32 %v805_v53, %v815_v56  ;;  %v700_v59 = vadd.f32 %v685_v57, %v537_v55  ;;  %v483_v61 = vpop.f32.mrf.mxu0  ;;  %v541_v9 = vpop.f32.mrf.mxu1 }
  0xe0   : > { %v540_v0 = vadd.f32 %v539_v60, %v483_v61 }
  0xe1   : > { %v835_v62 = vpack.c.bf16 %v825_v58, %v825_v58  ;;  %v792_v63 = vadd.f32 %v777_v54, %v700_v59 }
  0xe3   : > { %846 = vst.msk [vmem:[%s1289_s26 + $0x18] sm:$0xf] %vm839_vm4, %v835_v62  ;;  %v806_v1 = vadd.f32 %v1282_v49, %v792_v63 }
  0xe4   : > { %v780_v3 = vpop.f32.mrf.mxu3 }
  0xe5   : > { %v816_v2 = vmul.f32 0.2, %v806_v1 }
  0xe6   : > { %v688_v4 = vpop.f32.mrf.mxu2 }
  0xe7   : > { %v826_v5 = vmax.f32 %v806_v1, %v816_v2  ;;  %v701_v6 = vadd.f32 %v688_v4, %v540_v0  ;;  %v485_v10 = vpop.f32.mrf.mxu0 }
  0xe8   : > { %v542_v12 = vadd.f32 %v541_v9, %v485_v10 }
  0xe9   : > { %v836_v7 = vpack.c.bf16 %v826_v5, %v826_v5  ;;  %v793_v8 = vadd.f32 %v780_v3, %v701_v6 }
  0xeb   : > { %847 = vst.msk [vmem:[%s1289_s26 + $0x1c] sm:$0xf] %vm839_vm4, %v836_v7  ;;  %v807_v11 = vadd.f32 %v1282_v49, %v793_v8 }
  0xec   : > { %v782_v17 = vpop.f32.mrf.mxu3 }
  0xed   : > { %v817_v13 = vmul.f32 0.2, %v807_v11 }
  0xee   : > { %v690_v14 = vpop.f32.mrf.mxu2 }
  0xef   : > { %v827_v15 = vmax.f32 %v807_v11, %v817_v13  ;;  %v702_v16 = vadd.f32 %v690_v14, %v542_v12 }
  0xf1   : > { %v837_v18 = vpack.c.bf16 %v827_v15, %v827_v15  ;;  %v794_v19 = vadd.f32 %v782_v17, %v702_v16 }
  0xf3   : > { %848 = vst.msk [vmem:[%s1289_s26 + $0x20] sm:$0xf] %vm839_vm4, %v837_v18  ;;  %v808_v20 = vadd.f32 %v1282_v49, %v794_v19 }
  0xf5   : > { %v818_v21 = vmul.f32 0.2, %v808_v20 }
  0xf7   : > { %v828_v22 = vmax.f32 %v808_v20, %v818_v21 }
  0xf9   : > { %v838_v23 = vpack.c.bf16 %v828_v22, %v828_v22 }
  0xfb   : > { %849 = vst.msk [vmem:[%s1289_s26 + $0x24] sm:$0xf] %vm839_vm4, %v838_v23 }
  0xfc PF: > { %s14_s17 = sadd.s32 1, %s1138_s17   ;;  %s1334_s15 = smov %s1134_s16 }
  0xfd   : > { %p11_p5 = scmp.ge.s32.totalorder %s14_s17, 4   ;;  %s1335_s16 = smov %s1337_s18 }
  0xff   :  { %13 = sbr.rel (!%p11_p5) target bundleno = 2 (0x2), region = 72 }

// kernel: discriminator_forward.5
= control target key start
LH: loop header
LB: loop body
LE: loop exit
PB: predicated region body
PF: predicated region fallthrough
CT: control target
= control target key end

     0   :  { %s864_s15 = smov 0   ;;  %s866_s16 = smov 0   ;;  %s960_s0 = inlined_call_operand.vmem [shape: bf16[2,48,32], index: 0, kind: input, shape index: {}, may-alias: {0,1}]   ;;  %s961_s1 = inlined_call_operand.vmem [shape: bf16[2,48,32], index: 1, kind: input, shape index: {}, may-alias: {0,1}]   ;;  %s962_s2 = inlined_call_operand.vmem [shape: bf16[4,32,16], index: 2, kind: input, shape index: {}]   ;;  %s963_s3 = inlined_call_operand.vmem [shape: f32[1,16], index: 3, kind: input, shape index: {}]   ;;  %s964_s4 = inlined_call_operand.vmem [shape: bf16[2,32,16], index: 4, kind: output, shape index: {}]  }
   0x1   :  { %s868_s17 = smov 0  }
   0x2 LB: > { %s26_s18 = sadd.s32 1, %s833_s16  ;;  %p708_p0 = scmp.ge.s32.totalorder %s837_s17, 1  ;;  %s837_s17 = sphi %s868_s17, %s14_s17   ;;  %s833_s16 = sphi %s866_s16, %s966_s16   ;;  %s829_s15 = sphi %s864_s15, %s965_s15  }
   0x3   : > { %p28_p1 = scmp.ge.s32.totalorder %s26_s18, 2  ;;  %p216_p2 = scmp.lt.s32.totalorder %s837_s17, 3 }
   0x5   : > { %s968_s18 = smov (%p28_p1, %s26_s18), 0  ;;  %p217_p3 = pnand %p708_p0, %p216_p2 }
   0x6   : > { %p270_p4 = scmp.lt.s32.totalorder (!%p217_p3), %s829_s15, 1 }
   0x7   : > { %220 = sbr.rel (%p217_p3) target bundleno = 207 (0xcf), region = 36 }
   0xc   : > { %v778_v0 = vld [vmem:[%s962_s2 + $0x18] sm:$0xff]  ;;  %v776_v1 = vld [vmem:[%s962_s2 + $0x8] sm:$0xff]  ;;  %v777_v4 = vld [vmem:[%s962_s2 + $0x10] sm:$0xff]  ;;  %s970_s15 = smov (!%p270_p4, %s829_s15), 1  ;;  %vm312_vm0 = vcmask 257024   ;;  %vm381_vm1 = vcmask 261120  }
   0xd   : > { %v782_v2 = vld [vmem:[%s962_s2 + $0x38] sm:$0xff]  ;;  %v780_v3 = vld [vmem:[%s962_s2 + $0x28] sm:$0xff]  ;;  %394 = vmatpush.bf16.msra.mxu0 %v778_v0  ;;  %429 = vmatpush.bf16.msra.mxu1 %v776_v1  ;;  %v775_v5 = vld [vmem:[%s962_s2] sm:$0xff]  ;;  %s787_s9 = smul.u32 24, %s970_s15  ;;  %vm348_vm2 = vsmask.f32 7424 }
   0xe   : > { %557 = vmatpush.bf16.msra.mxu3 %v782_v2  ;;  %501 = vmatpush.bf16.msra.mxu2 %v780_v3  ;;  %v781_v6 = vld [vmem:[%s962_s2 + $0x30] sm:$0xff]  ;;  %v779_v7 = vld [vmem:[%s962_s2 + $0x20] sm:$0xff]  ;;  %vm527_vm3 = vcmask 1044480   ;;  %vm455_vm4 = vsmask.f32 5376  ;;  %s773_s23 = sshll.u32 %s970_s15, 4 }
   0xf   : > { %s277_s12 = scalar_lea.vmem %s960_s0, %s787_s9  ;;  %s772_s13 = sadd.s32 16, %s787_s9  ;;  %vm594_vm5 = vcmask 125952  }
  0x10   : > { %v308_v8 = vld [vmem:[%s277_s12] sm:$0xf]  ;;  %v309_v9 = vld [vmem:[%s277_s12 + $0x4] sm:$0xf]  ;;  %v310_v10 = vld [vmem:[%s277_s12 + $0x8] sm:$0xf]  ;;  %s293_s20 = scalar_lea.vmem %s961_s1, %s772_s13  ;;  %s941_s26 = scalar_lea.vmem %s964_s4, %s773_s23 }
  0x11   : > { %395 = vmatpush.bf16.msra.mxu0 %v777_v4  ;;  %430 = vmatpush.bf16.msra.mxu1 %v775_v5  ;;  %v311_v11 = vld [vmem:[%s277_s12 + $0xc] sm:$0xf]  ;;  %313 = vst.msk [vmem:[#allocation2] sm:$0xf] %vm312_vm0, %v308_v8  ;;  %v317_v12 = vld [vmem:[%s293_s20] sm:$0xf] }
  0x12   : > { %558 = vmatpush.bf16.msra.mxu3 %v781_v6  ;;  %502 = vmatpush.bf16.msra.mxu2 %v779_v7  ;;  %314 = vst.msk [vmem:[#allocation2 + $0x4] sm:$0xf] %vm312_vm0, %v309_v9  ;;  %v814_v4 = vld [vmem:[%s963_s3] ss:$0 sm:$0xff] }
  0x13   : > { %315 = vst.msk [vmem:[#allocation2 + $0x8] sm:$0xf] %vm312_vm0, %v310_v10 }
  0x14   : > { %316 = vst.msk [vmem:[#allocation2 + $0xc] sm:$0xf] %vm312_vm0, %v311_v11 }
  0x15   : > { %319 = vst.msk [vmem:[#allocation2 + $0x10] sm:$0xf] %vm312_vm0, %v317_v12 }
  0x18   : > { %v518_v13 = vld [vmem:[#allocation2] sm:$0x8] }
  0x19   : > { %v442_v14 = vld [vmem:[#allocation2] sm:$0xc]  ;;  %v525_v16 = vunpack.c.l.b16 %v518_v13 }
  0x1a   : > { %v784_v15 = vld [vmem:[#allocation2] sm:$0xff]   ;;  %v451_v17 = vunpack.c.l.b16 %v442_v14 }
  0x1b   : > { %v350_v18 = vshrl.u32 %v784_v15, 16  ;;  %v352_v19 = vshll.u32 %v784_v15, 16  ;;  %739 = vmatmul.msk.bf16.vlgmr.msra.gmra.mxu1 %vm381_vm1, %v784_v15  ;;  %v786_v20 = vunpack.c.h.b16 %v784_v15  ;;  %v774_v21 = vld [vmem:[#allocation2 + $0x8] sm:$0xff] }
  0x1c   : > { %v329_v25 = vld [vmem:[#allocation2 + $0x10] sm:$0x1]  ;;  %v357_v26 = vshll.u32 %v774_v21, 16  ;;  %v529_v27 = vrot.slane %v774_v21, 3  ;;  %v361_v28 = vshrl.u32 %v774_v21, 16 }
  0x1d   : > { %v354_v22 = vrot.slane %v352_v19, 1  ;;  %v526_v23 = vpack.c.b16 %v786_v20, %v525_v16  ;;  %v453_v24 = vpack.c.b16 %v786_v20, %v451_v17  ;;  %v443_v29 = vld [vmem:[#allocation2 + $0x10] sm:$0x7]  ;;  %v344_v37 = vunpack.c.l.b16 %v329_v25 }
  0x1e   : > { %v359_v34 = vrot.slane %v357_v26, 1  ;;  %v464_v35 = vrot.slane %v361_v28, 2  ;;  %v465_v36 = vrot.slane %v357_v26, 3  ;;  %v452_v41 = vunpack.c.l.b16 %v443_v29 }
  0x1f   : > { %v355_v30 = vor.u32 %v354_v22, %v350_v18  ;;  %v528_v31 = vrot.slane %v526_v23, 3  ;;  %v457_v32 = vshrl.u32 %v453_v24, 16  ;;  %v460_v33 = vshll.u32 %v453_v24, 16 }
  0x20   : > { %v466_v43 = vor.u32 %v465_v36, %v464_v35  ;;  %v454_v45 = vpack.c.b16 %v452_v41, %v452_v41  ;;  %v347_v46 = vpack.c.b16 %v344_v37, %v344_v37  ;;  %v363_v54 = vor.u32 %v361_v28, %v359_v34 }
  0x21   : > { %v530_v38 = vsel %vm527_vm3, %v528_v31, %v529_v27  ;;  %v459_v39 = vrot.slane %v457_v32, 2  ;;  %v462_v40 = vrot.slane %v460_v33, 3  ;;  %v360_v42 = vsel %vm348_vm2, %v355_v30, %v359_v34 }
  0x22   : > { %767 = vmatmul.msk.bf16.vlgmr.msra.gmra.mxu3 %vm381_vm1, %v530_v38  ;;  %729 = vmatmul.msk.bf16.vlgmr.msra.gmra.mxu0 %vm381_vm1, %v360_v42  ;;  %v469_v48 = vshrl.u32 %v454_v45, 16  ;;  %v472_v49 = vshll.u32 %v454_v45, 16  ;;  %v365_v50 = vshll.u32 %v347_v46, 16  ;;  %v531_v51 = vrot.slane %v454_v45, 3 }
  0x23   : > { %v463_v44 = vor.u32 %v462_v40, %v459_v39 }
  0x24   : > { %v471_v52 = vrot.slane %v469_v48, 2  ;;  %v474_v53 = vrot.slane %v472_v49, 3  ;;  %v367_v55 = vrot.slane %v365_v50, 1  ;;  %v532_v56 = vsel %vm527_vm3, %v529_v27, %v531_v51 }
  0x25   : > { %v467_v47 = vsel %vm455_vm4, %v463_v44, %v466_v43 }
  0x26   : > { %753 = vmatmul.msk.bf16.vlgmr.msra.gmra.mxu2 %vm381_vm1, %v467_v47  ;;  %v475_v57 = vor.u32 %v474_v53, %v471_v52  ;;  %v368_v58 = vsel %vm348_vm2, %v363_v54, %v367_v55 }
  0x28   : > { %v476_v59 = vsel %vm455_vm4, %v466_v43, %v475_v57 }
  0x2b   : > { %740 = vmatmul.msk.bf16.gmra.mxu1 %vm381_vm1, %v774_v21 }
  0x32   : > { %768 = vmatmul.msk.bf16.gmra.mxu3 %vm381_vm1, %v532_v56  ;;  %730 = vmatmul.msk.bf16.gmra.mxu0 %vm381_vm1, %v368_v58 }
  0x36   : > { %754 = vmatmul.msk.bf16.gmra.mxu2 %vm381_vm1, %v476_v59 }
  0x98   : > { %v432_v60 = vpop.f32.mrf.mxu1 }
  0x9f   : > { %v397_v61 = vpop.f32.mrf.mxu0 }
  0xa0   : > { %v433_v63 = vadd.f32 %v432_v60, %v397_v61  ;;  %v434_v0 = vpop.f32.mrf.mxu1 }
  0xa5   : > { %v560_v62 = vpop.f32.mrf.mxu3 }
  0xa7   : > { %v399_v1 = vpop.f32.mrf.mxu0 }
  0xa8   : > { %v435_v8 = vadd.f32 %v434_v0, %v399_v1  ;;  %v437_v14 = vpop.f32.mrf.mxu1 }
  0xa9   : > { %v504_v2 = vpop.f32.mrf.mxu2 }
  0xaa   : > { %v514_v3 = vadd.f32 %v504_v2, %v433_v63 }
  0xac   : > { %v570_v5 = vadd.f32 %v560_v62, %v514_v3 }
  0xad   : > { %v562_v7 = vpop.f32.mrf.mxu3 }
  0xae   : > { %v578_v6 = vadd.f32 %v814_v4, %v570_v5 }
  0xaf   : > { %v402_v13 = vpop.f32.mrf.mxu0 }
  0xb0   : > { %v582_v9 = vmul.f32 0.2, %v578_v6  ;;  %v438_v17 = vadd.f32 %v437_v14, %v402_v13  ;;  %v439_v27 = vpop.f32.mrf.mxu1 }
  0xb1   : > { %v506_v10 = vpop.f32.mrf.mxu2 }
  0xb2   : > { %v586_v11 = vmax.f32 %v578_v6, %v582_v9  ;;  %v515_v12 = vadd.f32 %v506_v10, %v435_v8 }
  0xb4   : > { %v590_v15 = vpack.c.bf16 %v586_v11, %v586_v11  ;;  %v571_v16 = vadd.f32 %v562_v7, %v515_v12 }
  0xb5   : > { %v565_v20 = vpop.f32.mrf.mxu3 }
  0xb6   : > { %595 = vst.msk [vmem:[%s941_s26] sm:$0xf] %vm594_vm5, %v590_v15  ;;  %v579_v18 = vadd.f32 %v814_v4, %v571_v16 }
  0xb7   : > { %v404_v26 = vpop.f32.mrf.mxu0 }
  0xb8   : > { %v583_v19 = vmul.f32 0.2, %v579_v18  ;;  %v440_v29 = vadd.f32 %v439_v27, %v404_v26 }
  0xb9   : > { %v509_v21 = vpop.f32.mrf.mxu2 }
  0xba   : > { %v587_v22 = vmax.f32 %v579_v18, %v583_v19  ;;  %v516_v23 = vadd.f32 %v509_v21, %v438_v17 }
  0xbc   : > { %v591_v24 = vpack.c.bf16 %v587_v22, %v587_v22  ;;  %v572_v25 = vadd.f32 %v565_v20, %v516_v23 }
  0xbd   : > { %v567_v34 = vpop.f32.mrf.mxu3 }
  0xbe   : > { %596 = vst.msk [vmem:[%s941_s26 + $0x4] sm:$0xf] %vm594_vm5, %v591_v24  ;;  %v580_v28 = vadd.f32 %v814_v4, %v572_v25 }
  0xc0   : > { %v584_v30 = vmul.f32 0.2, %v580_v28 }
  0xc1   : > { %v511_v31 = vpop.f32.mrf.mxu2 }
  0xc2   : > { %v588_v32 = vmax.f32 %v580_v28, %v584_v30  ;;  %v517_v33 = vadd.f32 %v511_v31, %v440_v29 }
  0xc4   : > { %v592_v35 = vpack.c.bf16 %v588_v32, %v588_v32  ;;  %v573_v36 = vadd.f32 %v567_v34, %v517_v33 }
  0xc6   : > { %597 = vst.msk [vmem:[%s941_s26 + $0x8] sm:$0xf] %vm594_vm5, %v592_v35  ;;  %v581_v37 = vadd.f32 %v814_v4, %v573_v36 }
  0xc8   : > { %v585_v38 = vmul.f32 0.2, %v581_v37 }
  0xca   : > { %v589_v39 = vmax.f32 %v581_v37, %v585_v38 }
  0xcc   : > { %v593_v40 = vpack.c.bf16 %v589_v39, %v589_v39 }
  0xce   : > { %598 = vst.msk [vmem:[%s941_s26 + $0xc] sm:$0xf] %vm594_vm5, %v593_v40 }
  0xcf PF: > { %s14_s17 = sadd.s32 1, %s837_s17   ;;  %s965_s15 = smov %s833_s16 }
  0xd0   : > { %p11_p5 = scmp.ge.s32.totalorder %s14_s17, 4   ;;  %s966_s16 = smov %s968_s18 }
  0xd2   :  { %13 = sbr.rel (!%p11_p5) target bundleno = 2 (0x2), region = 72 }

// kernel: discriminator_forward.6
= control target key start
LH: loop header
LB: loop body
LE: loop exit
PB: predicated region body
PF: predicated region fallthrough
CT: control target
= control target key end

     0   :  { %s875_s15 = smov 0   ;;  %s877_s16 = smov 0   ;;  %s973_s0 = inlined_call_operand.vmem [shape: bf16[2,32,64], index: 0, kind: input, shape index: {}, may-alias: {0,1}]   ;;  %s974_s1 = inlined_call_operand.vmem [shape: bf16[2,32,64], index: 1, kind: input, shape index: {}, may-alias: {0,1}]   ;;  %s975_s2 = inlined_call_operand.vmem [shape: bf16[4,64,32], index: 2, kind: input, shape index: {}]   ;;  %s976_s3 = inlined_call_operand.vmem [shape: f32[1,32], index: 3, kind: input, shape index: {}]   ;;  %s977_s4 = inlined_call_operand.vmem [shape: bf16[2,16,32], index: 4, kind: output, shape index: {}]  }
   0x1   :  { %s879_s17 = smov 0  }
   0x2 LB: > { %s26_s18 = sadd.s32 1, %s844_s16  ;;  %p675_p0 = scmp.ge.s32.totalorder %s848_s17, 1  ;;  %s848_s17 = sphi %s879_s17, %s14_s17   ;;  %s844_s16 = sphi %s877_s16, %s979_s16   ;;  %s840_s15 = sphi %s875_s15, %s978_s15  }
   0x3   : > { %p28_p1 = scmp.ge.s32.totalorder %s26_s18, 2  ;;  %p204_p2 = scmp.lt.s32.totalorder %s848_s17, 3 }
   0x5   : > { %s981_s18 = smov (%p28_p1, %s26_s18), 0  ;;  %p205_p3 = pnand %p675_p0, %p204_p2 }
   0x6   : > { %p249_p4 = scmp.lt.s32.totalorder (!%p205_p3), %s840_s15, 1 }
   0x7   : > { %208 = sbr.rel (%p205_p3) target bundleno = 192 (0xc0), region = 36 }
   0xc   : > { %v783_v0 = vld [vmem:[%s975_s2 + $0x18] sm:$0xff]  ;;  %v782_v4 = vld [vmem:[%s975_s2 + $0x10] sm:$0xff]  ;;  %s983_s15 = smov (!%p249_p4, %s840_s15), 1  ;;  %v781_v8 = vld [vmem:[%s975_s2 + $0x8] sm:$0xff]  ;;  %vm283_vm0 = vcmask 519168   ;;  %vm355_vm1 = vcmask 523264  }
   0xd   : > { %v795_v1 = vld [vmem:[%s975_s2 + $0x78] sm:$0xff]  ;;  %403 = vmatpush.bf16.msra.mxu1 %v783_v0  ;;  %v794_v5 = vld [vmem:[%s975_s2 + $0x70] sm:$0xff]  ;;  %s776_s11 = sshll.u32 %s983_s15, 4  ;;  %v793_v9 = vld [vmem:[%s975_s2 + $0x68] sm:$0xff]  ;;  %vm504_vm2 = vcmask 1045504   ;;  %s779_s13 = sshll.u32 %s983_s15, 3 }
   0xe   : > { %v787_v2 = vld [vmem:[%s975_s2 + $0x38] sm:$0xff]  ;;  %539 = vmatpush.bf16.msra.mxu3 %v795_v1  ;;  %v786_v6 = vld [vmem:[%s975_s2 + $0x30] sm:$0xff]  ;;  %v785_v10 = vld [vmem:[%s975_s2 + $0x28] sm:$0xff]  ;;  %s256_s22 = scalar_lea.vmem %s973_s0, %s776_s11  ;;  %s778_s23 = sadd.s32 8, %s776_s11  ;;  %vm318_vm3 = vsmask.f32 7424 }
   0xf   : > { %v791_v3 = vld [vmem:[%s975_s2 + $0x58] sm:$0xff]  ;;  %363 = vmatpush.bf16.msra.mxu0 %v787_v2  ;;  %v790_v7 = vld [vmem:[%s975_s2 + $0x50] sm:$0xff]  ;;  %v789_v11 = vld [vmem:[%s975_s2 + $0x48] sm:$0xff]  ;;  %s267_s28 = scalar_lea.vmem %s974_s1, %s778_s23  ;;  %vm430_vm4 = vsmask.f32 6400  ;;  %s278_s20 = scalar_lea.vmem %s977_s4, %s779_s13  ;;  %vm563_vm5 = vcmask 257024  }
  0x10   : > { %479 = vmatpush.bf16.msra.mxu2 %v791_v3  ;;  %v281_v12 = vld [vmem:[%s256_s22] sm:$0xf]  ;;  %v282_v13 = vld [vmem:[%s256_s22 + $0x4] sm:$0xf] }
  0x11   : > { %404 = vmatpush.bf16.msra.mxu1 %v782_v4  ;;  %284 = vst.msk [vmem:[#allocation2] sm:$0xf] %vm283_vm0, %v281_v12  ;;  %v286_v14 = vld [vmem:[%s267_s28] sm:$0xf] }
  0x12   : > { %540 = vmatpush.bf16.msra.mxu3 %v794_v5  ;;  %285 = vst.msk [vmem:[#allocation2 + $0x4] sm:$0xf] %vm283_vm0, %v282_v13  ;;  %v780_v15 = vld [vmem:[%s975_s2] sm:$0xff] }
  0x13   : > { %364 = vmatpush.bf16.msra.mxu0 %v786_v6  ;;  %288 = vst.msk [vmem:[#allocation2 + $0x8] sm:$0xf] %vm283_vm0, %v286_v14  ;;  %v792_v16 = vld [vmem:[%s975_s2 + $0x60] sm:$0xff] }
  0x14   : > { %480 = vmatpush.bf16.msra.mxu2 %v790_v7  ;;  %v784_v17 = vld [vmem:[%s975_s2 + $0x20] sm:$0xff] }
  0x15   : > { %405 = vmatpush.bf16.msra.mxu1 %v781_v8  ;;  %v788_v18 = vld [vmem:[%s975_s2 + $0x40] sm:$0xff] }
  0x16   : > { %541 = vmatpush.bf16.msra.mxu3 %v793_v9  ;;  %v825_v60 = vld [vmem:[%s976_s3] ss:$0 sm:$0xff] }
  0x17   : > { %365 = vmatpush.bf16.msra.mxu0 %v785_v10 }
  0x18   : > { %481 = vmatpush.bf16.msra.mxu2 %v789_v11  ;;  %v413_v19 = vld [vmem:[#allocation2] sm:$0xe] }
  0x19   : > { %406 = vmatpush.bf16.msra.mxu1 %v780_v15  ;;  %v491_v20 = vld [vmem:[#allocation2] sm:$0xc]  ;;  %v426_v22 = vunpack.c.l.b16 %v413_v19 }
  0x1a   : > { %542 = vmatpush.bf16.msra.mxu3 %v792_v16  ;;  %v797_v21 = vld [vmem:[#allocation2] sm:$0xff]   ;;  %v502_v23 = vunpack.c.l.b16 %v491_v20  ;;  %v414_v27 = vld [vmem:[#allocation2 + $0x8] sm:$0x3] }
  0x1b   : > { %366 = vmatpush.bf16.msra.mxu0 %v784_v17  ;;  %v799_v24 = vunpack.c.h.b16 %v797_v21  ;;  %v320_v25 = vshrl.u32 %v797_v21, 16  ;;  %v322_v26 = vshll.u32 %v797_v21, 16  ;;  %v300_v28 = vld [vmem:[#allocation2 + $0x8] sm:$0x1]  ;;  %v427_v29 = vunpack.c.l.b16 %v414_v27 }
  0x1c   : > { %482 = vmatpush.bf16.msra.mxu2 %v788_v18  ;;  %723 = vmatmul.msk.bf16.vlgmr.msra.gmra.mxu1 %vm355_vm1, %v797_v21  ;;  %v315_v30 = vunpack.c.l.b16 %v300_v28 }
  0x1d   : > { %v324_v31 = vrot.slane %v322_v26, 1  ;;  %v428_v32 = vpack.c.b16 %v799_v24, %v426_v22  ;;  %v503_v33 = vpack.c.b16 %v799_v24, %v502_v23  ;;  %v429_v34 = vpack.c.b16 %v427_v29, %v427_v29 }
  0x1e   : > { %v317_v35 = vpack.c.b16 %v315_v30, %v315_v30 }
  0x1f   : > { %v505_v36 = vrot.slane %v503_v33, 2  ;;  %v325_v37 = vor.u32 %v324_v31, %v320_v25  ;;  %v432_v38 = vshrl.u32 %v428_v32, 16  ;;  %v435_v39 = vshll.u32 %v428_v32, 16 }
  0x20   : > { %v506_v40 = vrot.slane %v429_v34, 2  ;;  %v327_v41 = vshll.u32 %v317_v35, 16  ;;  %v440_v42 = vshrl.u32 %v429_v34, 16  ;;  %v443_v43 = vshll.u32 %v429_v34, 16 }
  0x21   : > { %v434_v44 = vrot.slane %v432_v38, 1  ;;  %v437_v45 = vrot.slane %v435_v39, 2 }
  0x22   : > { %v507_v46 = vsel %vm504_vm2, %v505_v36, %v506_v40  ;;  %v329_v47 = vrot.slane %v327_v41, 1  ;;  %v442_v48 = vrot.slane %v440_v42, 1  ;;  %v445_v49 = vrot.slane %v443_v43, 2 }
  0x23   : > { %773 = vmatmul.msk.bf16.vlgmr.msra.gmra.mxu3 %vm355_vm1, %v507_v46  ;;  %v438_v50 = vor.u32 %v437_v45, %v434_v44 }
  0x24   : > { %v330_v51 = vsel %vm318_vm3, %v325_v37, %v329_v47  ;;  %v446_v52 = vor.u32 %v445_v49, %v442_v48 }
  0x25   : > { %706 = vmatmul.msk.bf16.vlgmr.msra.gmra.mxu0 %vm355_vm1, %v330_v51 }
  0x26   : > { %v447_v53 = vsel %vm430_vm4, %v438_v50, %v446_v52 }
  0x27   : > { %748 = vmatmul.msk.bf16.vlgmr.msra.gmra.mxu2 %vm355_vm1, %v447_v53 }
  0x99   : > { %v408_v55 = vpop.f32.mrf.mxu1 }
  0xa1   : > { %v410_v0 = vpop.f32.mrf.mxu1 }
  0xa2   : > { %v368_v54 = vpop.f32.mrf.mxu0 }
  0xa3   : > { %v409_v56 = vadd.f32 %v408_v55, %v368_v54 }
  0xa6   : > { %v544_v57 = vpop.f32.mrf.mxu3 }
  0xaa   : > { %v484_v58 = vpop.f32.mrf.mxu2  ;;  %v370_v62 = vpop.f32.mrf.mxu0 }
  0xab   : > { %v489_v59 = vadd.f32 %v484_v58, %v409_v56  ;;  %v411_v1 = vadd.f32 %v410_v0, %v370_v62 }
  0xad   : > { %v549_v61 = vadd.f32 %v544_v57, %v489_v59 }
  0xae   : > { %v546_v6 = vpop.f32.mrf.mxu3 }
  0xaf   : > { %v555_v63 = vadd.f32 %v825_v60, %v549_v61 }
  0xb1   : > { %v557_v2 = vmul.f32 0.2, %v555_v63 }
  0xb2   : > { %v486_v3 = vpop.f32.mrf.mxu2 }
  0xb3   : > { %v559_v4 = vmax.f32 %v555_v63, %v557_v2  ;;  %v490_v5 = vadd.f32 %v486_v3, %v411_v1 }
  0xb5   : > { %v561_v7 = vpack.c.bf16 %v559_v4, %v559_v4  ;;  %v550_v8 = vadd.f32 %v546_v6, %v490_v5 }
  0xb7   : > { %564 = vst.msk [vmem:[%s278_s20] sm:$0xf] %vm563_vm5, %v561_v7  ;;  %v556_v9 = vadd.f32 %v825_v60, %v550_v8 }
  0xb9   : > { %v558_v10 = vmul.f32 0.2, %v556_v9 }
  0xbb   : > { %v560_v11 = vmax.f32 %v556_v9, %v558_v10 }
  0xbd   : > { %v562_v12 = vpack.c.bf16 %v560_v11, %v560_v11 }
  0xbf   : > { %565 = vst.msk [vmem:[%s278_s20 + $0x4] sm:$0xf] %vm563_vm5, %v562_v12 }
  0xc0 PF: > { %s14_s17 = sadd.s32 1, %s848_s17   ;;  %s978_s15 = smov %s844_s16 }
  0xc1   : > { %p11_p5 = scmp.ge.s32.totalorder %s14_s17, 4   ;;  %s979_s16 = smov %s981_s18 }
  0xc3   :  { %13 = sbr.rel (!%p11_p5) target bundleno = 2 (0x2), region = 72 }

// kernel: discriminator_forward.7
= control target key start
LH: loop header
LB: loop body
LE: loop exit
PB: predicated region body
PF: predicated region fallthrough
CT: control target
= control target key end

     0   :  { %s1575_s15 = smov 0   ;;  %s1577_s16 = smov 0   ;;  %s1800_s0 = inlined_call_operand.vmem [shape: bf16[2,32,32], index: 0, kind: input, shape index: {}, may-alias: {0,1}]   ;;  %s1801_s1 = inlined_call_operand.vmem [shape: bf16[2,32,32], index: 1, kind: input, shape index: {}, may-alias: {0,1}]   ;;  %s1802_s2 = inlined_call_operand.vmem [shape: bf16[16,32,8], index: 2, kind: input, shape index: {}]   ;;  %s1803_s3 = inlined_call_operand.vmem [shape: f32[1,8], index: 3, kind: input, shape index: {}]   ;;  %s1804_s4 = inlined_call_operand.vmem [shape: f32[2,16,8], index: 4, kind: output, shape index: {}]  }
   0x1   :  { %s1579_s17 = smov 0  }
   0x2 LB: > { %s26_s18 = sadd.s32 1, %s1544_s16  ;;  %p1239_p0 = scmp.ge.s32.totalorder %s1548_s17, 1  ;;  %s1548_s17 = sphi %s1579_s17, %s14_s17   ;;  %s1544_s16 = sphi %s1577_s16, %s1806_s16   ;;  %s1540_s15 = sphi %s1575_s15, %s1805_s15  }
   0x3   : > { %p28_p1 = scmp.ge.s32.totalorder %s26_s18, 2  ;;  %p204_p2 = scmp.lt.s32.totalorder %s1548_s17, 3 }
   0x5   : > { %s1808_s18 = smov (%p28_p1, %s26_s18), 0  ;;  %p205_p3 = pnand %p1239_p0, %p204_p2 }
   0x6   : > { %p249_p4 = scmp.lt.s32.totalorder (!%p205_p3), %s1540_s15, 1 }
   0x7   : > { %208 = sbr.rel (%p205_p3) target bundleno = 264 (0x108), region = 36 }
   0xc   : > { %v1457_v0 = vld [vmem:[%s1802_s2 + $0x8] sm:$0xff]  ;;  %v1459_v2 = vld [vmem:[%s1802_s2 + $0x18] sm:$0xff]  ;;  %v1456_v4 = vld [vmem:[%s1802_s2] sm:$0xff]  ;;  %s1810_s15 = smov (!%p249_p4, %s1540_s15), 1  ;;  %vm283_vm0 = vcmask 257024   ;;  %vm335_vm1 = vcmask 261120  }
   0xd   : > { %v1461_v1 = vld [vmem:[%s1802_s2 + $0x28] sm:$0xff]  ;;  %v1463_v3 = vld [vmem:[%s1802_s2 + $0x38] sm:$0xff]  ;;  %373 = vmatpush.bf16.msra.mxu1 %v1457_v0  ;;  %v1460_v5 = vld [vmem:[%s1802_s2 + $0x20] sm:$0xff]  ;;  %345 = vmatpush.bf16.msra.mxu0 %v1459_v2  ;;  %s1617_s9 = sshll.u32 %s1810_s15, 4  ;;  %vm390_vm2 = vcmask 1046528   ;;  %vm594_vm6 = vcmask 1044480  }
   0xe   : > { %415 = vmatpush.bf16.msra.mxu2 %v1461_v1  ;;  %473 = vmatpush.bf16.msra.mxu3 %v1463_v3  ;;  %v1458_v6 = vld [vmem:[%s1802_s2 + $0x10] sm:$0xff]  ;;  %v1469_v8 = vld [vmem:[%s1802_s2 + $0x68] sm:$0xff]  ;;  %s256_s20 = scalar_lea.vmem %s1800_s0, %s1617_s9  ;;  %s1454_s21 = sadd.s32 8, %s1617_s9  ;;  %v1471_v10 = vld [vmem:[%s1802_s2 + $0x78] sm:$0xff]  ;;  %vm310_vm3 = vsmask.f32 7424 }
   0xf   : > { %v1462_v7 = vld [vmem:[%s1802_s2 + $0x30] sm:$0xff]  ;;  %v1465_v9 = vld [vmem:[%s1802_s2 + $0x48] sm:$0xff]  ;;  %v1467_v11 = vld [vmem:[%s1802_s2 + $0x58] sm:$0xff]  ;;  %s267_s27 = scalar_lea.vmem %s1801_s1, %s1454_s21  ;;  %vm434_vm4 = vsmask.f32 6400  ;;  %vm492_vm7 = vcmask 1045504   ;;  %s278_s28 = scalar_lea.vmem %s1804_s4, %s1617_s9 }
  0x10   : > { %v281_v12 = vld [vmem:[%s256_s20] sm:$0xf]  ;;  %v282_v13 = vld [vmem:[%s256_s20 + $0x4] sm:$0xf]  ;;  %v1466_v18 = vld [vmem:[%s1802_s2 + $0x50] sm:$0xff]  ;;  %vm1127_vm12 = vcmask 64512  }
  0x11   : > { %374 = vmatpush.bf16.msra.mxu1 %v1456_v4  ;;  %284 = vst.msk [vmem:[#allocation2] sm:$0xf] %vm283_vm0, %v281_v12  ;;  %v287_v14 = vld [vmem:[%s267_s27 + $0x4] sm:$0xf]  ;;  %346 = vmatpush.bf16.msra.mxu0 %v1458_v6  ;;  %v286_v15 = vld [vmem:[%s267_s27] sm:$0xf] }
  0x12   : > { %416 = vmatpush.bf16.msra.mxu2 %v1460_v5  ;;  %474 = vmatpush.bf16.msra.mxu3 %v1462_v7  ;;  %285 = vst.msk [vmem:[#allocation2 + $0x4] sm:$0xf] %vm283_vm0, %v282_v13  ;;  %v1468_v16 = vld [vmem:[%s1802_s2 + $0x60] sm:$0xff]  ;;  %v1470_v19 = vld [vmem:[%s1802_s2 + $0x70] sm:$0xff]  ;;  %v1475_v20 = vld [vmem:[%s1802_s2 + $0x98] sm:$0xff] }
  0x13   : > { %v1464_v17 = vld [vmem:[%s1802_s2 + $0x40] sm:$0xff]  ;;  %289 = vst.msk [vmem:[#allocation2 + $0xc] sm:$0xf] %vm283_vm0, %v287_v14  ;;  %v1474_v31 = vld [vmem:[%s1802_s2 + $0x90] sm:$0xff]  ;;  %v1477_v56 = vld [vmem:[%s1802_s2 + $0xa8] sm:$0xff] }
  0x14   : > { %288 = vst.msk [vmem:[#allocation2 + $0x8] sm:$0xf] %vm283_vm0, %v286_v15  ;;  %v1473_v1 = vld [vmem:[%s1802_s2 + $0x88] sm:$0xff]  ;;  %v1479_v6 = vld [vmem:[%s1802_s2 + $0xb8] sm:$0xff]  ;;  %vm536_vm5 = vsmask.f32 5376 }
  0x15   : > { %517 = vmatpush.bf16.msrb.mxu0 %v1465_v9  ;;  %575 = vmatpush.bf16.msrb.mxu1 %v1467_v11  ;;  %v1476_v9 = vld [vmem:[%s1802_s2 + $0xa0] sm:$0xff]  ;;  %vm638_vm8 = vsmask.f32 4352 }
  0x16   : > { %619 = vmatpush.bf16.msrb.mxu2 %v1469_v8  ;;  %677 = vmatpush.bf16.msrb.mxu3 %v1471_v10 }
  0x18   : > { %v381_v21 = vld [vmem:[#allocation2] sm:$0xe] }
  0x19   : > { %518 = vmatpush.bf16.msrb.mxu0 %v1464_v17  ;;  %576 = vmatpush.bf16.msrb.mxu1 %v1466_v18  ;;  %v483_v22 = vld [vmem:[#allocation2] sm:$0xc]  ;;  %v388_v25 = vunpack.c.l.b16 %v381_v21  ;;  %v1483_v21 = vld [vmem:[%s1802_s2 + $0xd8] sm:$0xff] }
  0x1a   : > { %620 = vmatpush.bf16.msrb.mxu2 %v1468_v16  ;;  %678 = vmatpush.bf16.msrb.mxu3 %v1470_v19  ;;  %v585_v23 = vld [vmem:[#allocation2] sm:$0x8]  ;;  %v490_v26 = vunpack.c.l.b16 %v483_v22  ;;  %v726_v11 = vld [vmem:[#allocation2 + $0xc] sm:$0x1] }
  0x1b   : > { %v1489_v24 = vld [vmem:[#allocation2] sm:$0xff]   ;;  %v592_v27 = vunpack.c.l.b16 %v585_v23  ;;  %v296_v32 = vld [vmem:[#allocation2 + $0x8] sm:$0x1] }
  0x1c   : > { %v1658_v28 = vunpack.c.h.b16 %v1489_v24  ;;  %v312_v29 = vshrl.u32 %v1489_v24, 16  ;;  %v314_v30 = vshll.u32 %v1489_v24, 16  ;;  %1267 = vmatmul.msk.bf16.vlgmr.msra.gmra.mxu1 %vm335_vm1, %v1489_v24  ;;  %v425_v33 = vld [vmem:[#allocation2 + $0x8] sm:$0x3]  ;;  %v307_v36 = vunpack.c.l.b16 %v296_v32  ;;  %v1472_v17 = vld [vmem:[%s1802_s2 + $0x80] sm:$0xff] }
  0x1d   : > { %v527_v34 = vld [vmem:[#allocation2 + $0x8] sm:$0x7]  ;;  %773 = vmatpush.bf16.msra.mxu1 %v1475_v20  ;;  %v432_v38 = vunpack.c.l.b16 %v425_v33  ;;  %v737_v20 = vunpack.c.l.b16 %v726_v11  ;;  %v1482_v33 = vld [vmem:[%s1802_s2 + $0xd0] sm:$0xff] }
  0x1e   : > { %v316_v35 = vrot.slane %v314_v30, 1  ;;  %v389_v37 = vpack.c.b16 %v1658_v28, %v388_v25  ;;  %v1665_v39 = vld [vmem:[#allocation2 + $0x8] sm:$0xff]   ;;  %v1668_v40 = vpack.c.b16 %v1658_v28, %v490_v26  ;;  %v534_v41 = vunpack.c.l.b16 %v527_v34  ;;  %v1478_v25 = vld [vmem:[%s1802_s2 + $0xb0] sm:$0xff] }
  0x1f   : > { %v1671_v42 = vpack.c.b16 %v1658_v28, %v592_v27  ;;  %v1674_v43 = vunpack.c.l.b16 %v1665_v39  ;;  %v309_v44 = vpack.c.b16 %v307_v36, %v307_v36  ;;  %v1676_v47 = vpack.c.b16 %v432_v38, %v432_v38  ;;  %v724_v10 = vld [vmem:[#allocation2 + $0x4] sm:$0xff]  }
  0x20   : > { %v391_v45 = vrot.slane %v389_v37, 1  ;;  %v317_v46 = vor.u32 %v316_v35, %v312_v29  ;;  %v436_v48 = vshrl.u32 %v389_v37, 16  ;;  %v439_v49 = vshll.u32 %v389_v37, 16  ;;  %v783_v38 = vld [vmem:[#allocation2 + $0x4] sm:$0xe] }
  0x21   : > { %v1678_v50 = vpack.c.b16 %v534_v41, %v534_v41  ;;  %v538_v51 = vshrl.u32 %v1668_v40, 16  ;;  %774 = vmatpush.bf16.msra.mxu1 %v1474_v31  ;;  %v392_v52 = vrot.slane %v309_v44, 1  ;;  %v319_v53 = vshll.u32 %v309_v44, 16  ;;  %v826_v41 = vld [vmem:[#allocation2 + $0xc] sm:$0x3] }
  0x22   : > { %v444_v54 = vshrl.u32 %v1676_v47, 16  ;;  %v447_v55 = vshll.u32 %v1676_v47, 16  ;;  %v438_v57 = vrot.slane %v436_v48, 1  ;;  %v441_v58 = vrot.slane %v439_v49, 2 }
  0x23   : > { %v540_v59 = vrot.slane %v538_v51, 2  ;;  %v541_v60 = vshll.u32 %v1668_v40, 16  ;;  %v393_v61 = vsel %vm390_vm2, %v391_v45, %v392_v52  ;;  %v321_v62 = vrot.slane %v319_v53, 1  ;;  %v1485_v53 = vld [vmem:[%s1802_s2 + $0xe8] sm:$0xff] }
  0x24   : > { %v446_v63 = vrot.slane %v444_v54, 1  ;;  %v449_v0 = vrot.slane %v447_v55, 2  ;;  %1280 = vmatmul.msk.bf16.vlgmr.msra.gmra.mxu2 %vm335_vm1, %v393_v61  ;;  %v442_v2 = vor.u32 %v441_v58, %v438_v57  ;;  %v546_v4 = vshrl.u32 %v1678_v50, 16  ;;  %v883_v55 = vld [vmem:[#allocation2 + $0x4] sm:$0xc] }
  0x25   : > { %v543_v3 = vrot.slane %v541_v60, 3  ;;  %v549_v5 = vshll.u32 %v1678_v50, 16  ;;  %v322_v7 = vsel %vm310_vm3, %v317_v46, %v321_v62  ;;  %816 = vmatpush.bf16.msra.mxu2 %v1477_v56  ;;  %v637_v16 = vpack.c.b16 %v1674_v43, %v1674_v43  ;;  %v926_v56 = vld [vmem:[#allocation2 + $0xc] sm:$0x7] }
  0x26   : > { %v450_v8 = vor.u32 %v449_v0, %v446_v63  ;;  %1258 = vmatmul.msk.bf16.vlgmr.msra.gmra.mxu0 %vm335_vm1, %v322_v7  ;;  %v548_v13 = vrot.slane %v546_v4, 2  ;;  %v640_v19 = vshrl.u32 %v1671_v42, 16  ;;  %v643_v22 = vshll.u32 %v1671_v42, 16  ;;  %v1487_v0 = vld [vmem:[%s1802_s2 + $0xf8] sm:$0xff] }
  0x27   : > { %v544_v12 = vor.u32 %v543_v3, %v540_v59  ;;  %v551_v14 = vrot.slane %v549_v5, 3  ;;  %714 = vmatpush.bf16.msra.mxu0 %v1473_v1  ;;  %v648_v23 = vshrl.u32 %v637_v16, 16  ;;  %v651_v24 = vshll.u32 %v637_v16, 16  ;;  %v1484_v1 = vld [vmem:[%s1802_s2 + $0xe0] sm:$0xff] }
  0x28   : > { %v451_v15 = vsel %vm434_vm4, %v442_v2, %v450_v8  ;;  %v1717_v26 = vunpack.c.h.b16 %v724_v10  ;;  %v595_v29 = vrot.slane %v1671_v42, 3  ;;  %v596_v30 = vrot.slane %v1678_v50, 3  ;;  %v1480_v2 = vld [vmem:[%s1802_s2 + $0xc0] sm:$0xff] }
  0x29   : > { %1293 = vmatmul.msk.bf16.vlgmr.msra.gmra.mxu3 %vm335_vm1, %v451_v15  ;;  %v552_v18 = vor.u32 %v551_v14, %v548_v13  ;;  %817 = vmatpush.bf16.msra.mxu2 %v1476_v9  ;;  %v642_v31 = vrot.slane %v640_v19, 3  ;;  %v1723_v32 = vpack.c.b16 %v737_v20, %v737_v20  ;;  %v645_v34 = vrot.slane %v643_v22, 4 }
  0x2a   : > { %873 = vmatpush.bf16.msra.mxu3 %v1479_v6  ;;  %v650_v35 = vrot.slane %v648_v23, 3  ;;  %v653_v36 = vrot.slane %v651_v24, 4  ;;  %v743_v37 = vshll.u32 %v724_v10, 16  ;;  %v493_v42 = vrot.slane %v1668_v40, 2 }
  0x2b   : > { %v553_v27 = vsel %vm536_vm5, %v544_v12, %v552_v18  ;;  %715 = vmatpush.bf16.msra.mxu0 %v1472_v17  ;;  %v494_v44 = vrot.slane %v1676_v47, 2  ;;  %v597_v45 = vsel %vm594_vm6, %v595_v29, %v596_v30  ;;  %v741_v46 = vshrl.u32 %v724_v10, 16  ;;  %v1481_v47 = vld [vmem:[%s1802_s2 + $0xc8] sm:$0xff]  ;;  %v1486_v10 = vld [vmem:[%s1802_s2 + $0xf0] sm:$0xff] }
  0x2c   : > { %1319 = vmatmul.msk.bf16.vlgmr.msrb.gmra.mxu1 %vm335_vm1, %v553_v27  ;;  %v745_v48 = vrot.slane %v743_v37, 1  ;;  %v748_v49 = vshll.u32 %v1723_v32, 16  ;;  %v646_v50 = vor.u32 %v645_v34, %v642_v31  ;;  %v654_v51 = vor.u32 %v653_v36, %v650_v35 }
  0x2d   : > { %973 = vmatpush.bf16.msrb.mxu1 %v1483_v21  ;;  %v790_v52 = vunpack.c.l.b16 %v783_v38  ;;  %v833_v54 = vunpack.c.l.b16 %v826_v41  ;;  %v495_v40 = vsel %vm492_vm7, %v493_v42, %v494_v44  ;;  %v890_v59 = vunpack.c.l.b16 %v883_v55  ;;  %v983_v21 = vld [vmem:[#allocation2 + $0x4] sm:$0x8] }
  0x2e   : > { %874 = vmatpush.bf16.msra.mxu3 %v1478_v25  ;;  %v746_v57 = vor.u32 %v745_v48, %v741_v46  ;;  %v750_v58 = vrot.slane %v748_v49, 1  ;;  %v933_v60 = vunpack.c.l.b16 %v926_v56  ;;  %v655_v61 = vsel %vm638_vm8, %v646_v50, %v654_v51 }
  0x2f   : > { %v791_v62 = vpack.c.b16 %v1717_v26, %v790_v52  ;;  %v1742_v63 = vpack.c.b16 %v833_v54, %v833_v54  ;;  %v891_v4 = vpack.c.b16 %v1717_v26, %v890_v59  ;;  %v793_v12 = vrot.slane %v1723_v32, 1 }
  0x30   : > { %v751_v3 = vsel %vm310_vm3, %v746_v57, %v750_v58  ;;  %v934_v5 = vpack.c.b16 %v933_v60, %v933_v60  ;;  %v990_v31 = vunpack.c.l.b16 %v983_v21  ;;  %v1033_v32 = vunpack.c.h.b16 %v1665_v39 }
  0x31   : > { %974 = vmatpush.bf16.msrb.mxu1 %v1482_v33  ;;  %v836_v6 = vshrl.u32 %v791_v62, 16  ;;  %v839_v7 = vshll.u32 %v791_v62, 16  ;;  %v844_v8 = vshrl.u32 %v1742_v63, 16  ;;  %v847_v9 = vshll.u32 %v1742_v63, 16 }
  0x32   : > { %v792_v11 = vrot.slane %v791_v62, 1  ;;  %v936_v13 = vshrl.u32 %v891_v4, 16  ;;  %v939_v14 = vshll.u32 %v891_v4, 16  ;;  %v944_v15 = vshrl.u32 %v934_v5, 16 }
  0x33   : > { %v947_v16 = vshll.u32 %v934_v5, 16  ;;  %v838_v17 = vrot.slane %v836_v6, 1  ;;  %v841_v18 = vrot.slane %v839_v7, 2  ;;  %v846_v19 = vrot.slane %v844_v8, 1 }
  0x34   : > { %1332 = vmatmul.msk.bf16.vlgmr.msrb.gmra.mxu2 %vm335_vm1, %v597_v45  ;;  %v849_v20 = vrot.slane %v847_v9, 2  ;;  %v794_v22 = vsel %vm390_vm2, %v792_v11, %v793_v12  ;;  %v938_v23 = vrot.slane %v936_v13, 2  ;;  %v941_v24 = vrot.slane %v939_v14, 3 }
  0x35   : > { %1016 = vmatpush.bf16.msrb.mxu2 %v1485_v53  ;;  %v946_v25 = vrot.slane %v944_v15, 2  ;;  %v949_v27 = vrot.slane %v947_v16, 3  ;;  %v842_v29 = vor.u32 %v841_v18, %v838_v17  ;;  %v692_v33 = vpack.c.b16 %v1674_v43, %v1658_v28 }
  0x36   : > { %1306 = vmatmul.msk.bf16.vlgmr.msrb.gmra.mxu0 %vm335_vm1, %v495_v40  ;;  %v850_v30 = vor.u32 %v849_v20, %v846_v19  ;;  %v942_v34 = vor.u32 %v941_v24, %v938_v23  ;;  %v991_v37 = vpack.c.b16 %v1717_v26, %v990_v31  ;;  %v1034_v38 = vpack.c.b16 %v1033_v32, %v1033_v32 }
  0x37   : > { %916 = vmatpush.bf16.msrb.mxu0 %v1481_v47  ;;  %v950_v35 = vor.u32 %v949_v27, %v946_v25  ;;  %v993_v43 = vrot.slane %v934_v5, 3  ;;  %v892_v26 = vrot.slane %v891_v4, 2  ;;  %v893_v51 = vrot.slane %v1742_v63, 2 }
  0x38   : > { %v851_v36 = vsel %vm434_vm4, %v842_v29, %v850_v30  ;;  %v1036_v42 = vshrl.u32 %v991_v37, 16  ;;  %v1039_v39 = vshll.u32 %v991_v37, 16  ;;  %v1044_v44 = vshrl.u32 %v1034_v38, 16 }
  0x39   : > { %1345 = vmatmul.msk.bf16.vlgmr.msrb.gmra.mxu3 %vm335_vm1, %v655_v61  ;;  %1017 = vmatpush.bf16.msrb.mxu2 %v1484_v1  ;;  %v951_v41 = vsel %vm536_vm5, %v942_v34, %v950_v35  ;;  %v1047_v45 = vshll.u32 %v1034_v38, 16  ;;  %v992_v28 = vrot.slane %v991_v37, 3  ;;  %v894_v55 = vsel %vm492_vm7, %v892_v26, %v893_v51 }
  0x3a   : > { %1073 = vmatpush.bf16.msrb.mxu3 %v1487_v0  ;;  %v1038_v46 = vrot.slane %v1036_v42, 3  ;;  %v1041_v48 = vrot.slane %v1039_v39, 4  ;;  %v1046_v49 = vrot.slane %v1044_v44, 3 }
  0x3b   : > { %917 = vmatpush.bf16.msrb.mxu0 %v1480_v2  ;;  %v1049_v50 = vrot.slane %v1047_v45, 4  ;;  %v994_v52 = vsel %vm594_vm6, %v992_v28, %v993_v43  ;;  %v1517_v43 = vld [vmem:[%s1803_s3] ss:$0 sm:$0xff] }
  0x3c   : > { %1371 = vmatmul.msk.bf16.vlgmr.msra.gmra.mxu1 %vm335_vm1, %v751_v3  ;;  %v1042_v53 = vor.u32 %v1041_v48, %v1038_v46 }
  0x3d   : > { %v1050_v54 = vor.u32 %v1049_v50, %v1046_v49 }
  0x3e   : > { %1074 = vmatpush.bf16.msrb.mxu3 %v1486_v10 }
  0x3f   : > { %v1051_v56 = vsel %vm638_vm8, %v1042_v53, %v1050_v54 }
  0x44   : > { %1384 = vmatmul.msk.bf16.vlgmr.msra.gmra.mxu2 %vm335_vm1, %v794_v22 }
  0x46   : > { %1358 = vmatmul.msk.bf16.vlgmr.msra.gmra.mxu0 %vm335_vm1, %v692_v33 }
  0x49   : > { %1397 = vmatmul.msk.bf16.vlgmr.msra.gmra.mxu3 %vm335_vm1, %v851_v36 }
  0x4c   : > { %1423 = vmatmul.msk.bf16.vlgmr.msrb.gmra.mxu1 %vm335_vm1, %v951_v41 }
  0x54   : > { %1436 = vmatmul.msk.bf16.vlgmr.msrb.gmra.mxu2 %vm335_vm1, %v994_v52 }
  0x56   : > { %1410 = vmatmul.msk.bf16.vlgmr.msrb.gmra.mxu0 %vm335_vm1, %v894_v55 }
  0x59   : > { %1449 = vmatmul.msk.bf16.vlgmr.msrb.gmra.mxu3 %vm335_vm1, %v1051_v56 }
  0x99   : > { %v376_v40 = vpop.f32.mrf.mxu1 }
  0xa1   : > { %v378_v47 = vpop.f32.mrf.mxu1 }
  0xa3   : > { %v348_v57 = vpop.f32.mrf.mxu0 }
  0xa4   : > { %v377_v1 = vadd.f32 %v376_v40, %v348_v57 }
  0xa7   : > { %v418_v58 = vpop.f32.mrf.mxu2 }
  0xa8   : > { %v423_v4 = vadd.f32 %v418_v58, %v377_v1 }
  0xa9   : > { %v578_v59 = vpop.f32.mrf.mxu1 }
  0xab   : > { %v350_v60 = vpop.f32.mrf.mxu0 }
  0xac   : > { %v476_v61 = vpop.f32.mrf.mxu3  ;;  %v379_v9 = vadd.f32 %v378_v47, %v350_v60 }
  0xad   : > { %v481_v5 = vadd.f32 %v476_v61, %v423_v4 }
  0xaf   : > { %v420_v62 = vpop.f32.mrf.mxu2 }
  0xb0   : > { %v424_v12 = vadd.f32 %v420_v62, %v379_v9 }
  0xb1   : > { %v580_v2 = vpop.f32.mrf.mxu1 }
  0xb3   : > { %v520_v0 = vpop.f32.mrf.mxu0 }
  0xb4   : > { %v478_v63 = vpop.f32.mrf.mxu3  ;;  %v525_v8 = vadd.f32 %v520_v0, %v481_v5 }
  0xb5   : > { %v482_v14 = vadd.f32 %v478_v63, %v424_v12 }
  0xb6   : > { %v583_v13 = vadd.f32 %v578_v59, %v525_v8 }
  0xb7   : > { %v622_v3 = vpop.f32.mrf.mxu2 }
  0xb8   : > { %v627_v17 = vadd.f32 %v622_v3, %v583_v13 }
  0xb9   : > { %v776_v10 = vpop.f32.mrf.mxu1 }
  0xbb   : > { %v522_v6 = vpop.f32.mrf.mxu0 }
  0xbc   : > { %v680_v7 = vpop.f32.mrf.mxu3  ;;  %v526_v18 = vadd.f32 %v522_v6, %v482_v14 }
  0xbd   : > { %v685_v19 = vadd.f32 %v680_v7, %v627_v17 }
  0xbe   : > { %v584_v21 = vadd.f32 %v580_v2, %v526_v18 }
  0xbf   : > { %v624_v11 = vpop.f32.mrf.mxu2 }
  0xc0   : > { %v628_v27 = vadd.f32 %v624_v11, %v584_v21 }
  0xc1   : > { %v778_v23 = vpop.f32.mrf.mxu1 }
  0xc3   : > { %v717_v16 = vpop.f32.mrf.mxu0 }
  0xc4   : > { %v682_v15 = vpop.f32.mrf.mxu3  ;;  %v722_v22 = vadd.f32 %v717_v16, %v685_v19 }
  0xc5   : > { %v686_v30 = vadd.f32 %v682_v15, %v628_v27 }
  0xc6   : > { %v781_v29 = vadd.f32 %v776_v10, %v722_v22 }
  0xc7   : > { %v819_v20 = vpop.f32.mrf.mxu2 }
  0xc8   : > { %v824_v32 = vadd.f32 %v819_v20, %v781_v29 }
  0xc9   : > { %v976_v35 = vpop.f32.mrf.mxu1 }
  0xcb   : > { %v719_v24 = vpop.f32.mrf.mxu0 }
  0xcc   : > { %v876_v25 = vpop.f32.mrf.mxu3  ;;  %v723_v33 = vadd.f32 %v719_v24, %v686_v30 }
  0xcd   : > { %v881_v34 = vadd.f32 %v876_v25, %v824_v32 }
  0xce   : > { %v782_v38 = vadd.f32 %v778_v23, %v723_v33 }
  0xcf   : > { %v821_v31 = vpop.f32.mrf.mxu2 }
  0xd0   : > { %v825_v44 = vadd.f32 %v821_v31, %v782_v38 }
  0xd1   : > { %v978_v26 = vpop.f32.mrf.mxu1 }
  0xd3   : > { %v919_v37 = vpop.f32.mrf.mxu0 }
  0xd4   : > { %v878_v36 = vpop.f32.mrf.mxu3  ;;  %v924_v41 = vadd.f32 %v919_v37, %v881_v34 }
  0xd5   : > { %v882_v45 = vadd.f32 %v878_v36, %v825_v44 }
  0xd6   : > { %v981_v42 = vadd.f32 %v976_v35, %v924_v41 }
  0xd7   : > { %v1019_v39 = vpop.f32.mrf.mxu2 }
  0xd8   : > { %v1024_v28 = vadd.f32 %v1019_v39, %v981_v42 }
  0xdb   : > { %v921_v46 = vpop.f32.mrf.mxu0 }
  0xdc   : > { %v1076_v48 = vpop.f32.mrf.mxu3  ;;  %v925_v49 = vadd.f32 %v921_v46, %v882_v45 }
  0xdd   : > { %v1081_v50 = vadd.f32 %v1076_v48, %v1024_v28 }
  0xde   : > { %v982_v52 = vadd.f32 %v978_v26, %v925_v49 }
  0xdf   : > { %v1087_v51 = vadd.f32 %v1517_v43, %v1081_v50  ;;  %v1021_v53 = vpop.f32.mrf.mxu2 }
  0xe0   : > { %v1025_v56 = vadd.f32 %v1021_v53, %v982_v52 }
  0xe1   : > { %v1089_v54 = vsub.f32 0.0, %v1087_v51 }
  0xe3   : > { %v1091_v55 = vmul.f32 1.442695, %v1089_v54 }
  0xe4   : > { %v1078_v40 = vpop.f32.mrf.mxu3 }
  0xe5   : > { %1518 = vpow2.f32 %v1091_v55  ;;  %v1082_v47 = vadd.f32 %v1078_v40, %v1025_v56 }
  0xe7   : > { %v1088_v57 = vadd.f32 %v1517_v43, %v1082_v47 }
  0xe9   : > { %v1090_v58 = vsub.f32 0.0, %v1088_v57 }
  0xeb   : > { %v1519_v59 = vpop.eup %1518  ;;  %v1093_v60 = vmul.f32 1.442695, %v1090_v58 }
  0xec   : > { %v1095_v61 = vadd.f32 1.0, %v1519_v59 }
  0xed   : > { %1520 = vpow2.f32 %v1093_v60 }
  0xee   : > { %1522 = vrcp.f32 %v1095_v61  ;;  %v1108_v3 = vand.u32 2147483648, %v1095_v61  ;;  %v1106_v5 = vand.u32 2147483647, %v1095_v61  ;;  %vm1102_vm10 = vweird.f32 %v1095_v61 }
  0xf0   : > { %v1109_v8 = vor.u32 1.1754944e-38, %v1108_v3  ;;  %vm1107_vm13 = vcmp.eq.f32.partialorder %v1106_v5, 8.507059e+37 }
  0xf3   : > { %v1521_v62 = vpop.eup %1520 }
  0xf4   : > { %v1523_v63 = vpop.eup %1522  ;;  %v1096_v0 = vadd.f32 1.0, %v1521_v62 }
  0xf5   : > { %v1098_v1 = vmul.f32 %v1523_v63, %v1095_v61  ;;  %vm1103_vm9 = vweird.f32 %v1523_v63 }
  0xf6   : > { %1524 = vrcp.f32 %v1096_v0  ;;  %vm1104_vm11 = vmor %vm1102_vm10, %vm1103_vm9  ;;  %v1123_v13 = vand.u32 2147483648, %v1096_v0  ;;  %v1121_v15 = vand.u32 2147483647, %v1096_v0  ;;  %vm1117_vm15 = vweird.f32 %v1096_v0 }
  0xf7   : > { %v1099_v2 = vsub.f32 1.0, %v1098_v1 }
  0xf8   : > { %v1124_v17 = vor.u32 1.1754944e-38, %v1123_v13  ;;  %vm1122_vm1 = vcmp.eq.f32.partialorder %v1121_v15, 8.507059e+37 }
  0xf9   : > { %v1100_v4 = vmul.f32 %v1523_v63, %v1099_v2 }
  0xfb   : > { %v1101_v6 = vadd.f32 %v1523_v63, %v1100_v4 }
  0xfc   : > { %v1525_v7 = vpop.eup %1524 }
  0xfd   : > { %v1105_v9 = vsel %vm1104_vm11, %v1523_v63, %v1101_v6  ;;  %v1113_v10 = vmul.f32 %v1525_v7, %v1096_v0  ;;  %vm1118_vm14 = vweird.f32 %v1525_v7 }
  0xfe   : > { %v1110_v11 = vsel %vm1107_vm13, %v1109_v8, %v1105_v9  ;;  %vm1119_vm0 = vmor %vm1117_vm15, %vm1118_vm14 }
  0xff   : > { %1128 = vst.msk [vmem:[%s278_s28] sm:$0xff] %vm1127_vm12, %v1110_v11  ;;  %v1114_v12 = vsub.f32 1.0, %v1113_v10 }
 0x101   : > { %v1115_v14 = vmul.f32 %v1525_v7, %v1114_v12 }
 0x103   : > { %v1116_v16 = vadd.f32 %v1525_v7, %v1115_v14 }
 0x105   : > { %v1120_v18 = vsel %vm1119_vm0, %v1525_v7, %v1116_v16 }
 0x106   : > { %v1125_v19 = vsel %vm1122_vm1, %v1124_v17, %v1120_v18 }
 0x107   : > { %1129 = vst.msk [vmem:[%s278_s28 + $0x8] sm:$0xff] %vm1127_vm12, %v1125_v19 }
 0x108 PF: > { %s14_s17 = sadd.s32 1, %s1548_s17   ;;  %s1805_s15 = smov %s1544_s16 }
 0x109   : > { %p11_p5 = scmp.ge.s32.totalorder %s14_s17, 4   ;;  %s1806_s16 = smov %s1808_s18 }
 0x10b   :  { %13 = sbr.rel (!%p11_p5) target bundleno = 2 (0x2), region = 84 }

</bundles_post_ra>
